<compile_context>
chip_gen: v5e
topology: v5e:2x2
jax: 0.10.0
libtpu: 0.0.40
codegen_flags: <defaults>
</compile_context>

<pallas_src>
import jax
import jax.numpy as jnp
from jax.experimental import pallas as pl
from jax.experimental.pallas import tpu as pltpu


def decoder_step_kernel(
    emb_ref,      # (B, E)        embedded token (dropout == identity, eval mode)
    enc_ref,      # (B, S, 2H)    encoder states, batch-major
    h_ref,        # (B, H)
    c_ref,        # (B, H)
    attn_w_ref,   # (3H, H)       attention.attn weight (rows: [hidden ; enc])
    attn_b_ref,   # (1, H)        attention.attn bias
    v_ref,        # (1, H)        attention.v weight (no bias)
    w_rnn_ref,    # (2H+E+H, 4H)  stacked [w_ih ; w_hh], rows: [ctx ; emb ; h]
    b_rnn_ref,    # (1, 4H)       b_ih + b_hh (pre-summed)
    fc_w_ref,     # (3H+E, OUT)   rows: [h_new ; ctx ; emb] (original fc ordering)
    fc_b_ref,     # (1, OUT)
    out_ref,      # (B, OUT+2H)   packed [pred ‖ h_new ‖ c_new]
):
    B, E = emb_ref.shape
    S = enc_ref.shape[1]
    H = h_ref.shape[1]
    H2 = 2 * H
    OUT = fc_b_ref.shape[1]

    emb = emb_ref[...]
    enc = enc_ref[...]                 # (B, S, 2H)
    h = h_ref[...]
    c = c_ref[...]

    # ---- Attention: energy = tanh([hidden ; enc] @ Wa + ba), flat 2-D matmuls ----
    e_h = jnp.dot(h, attn_w_ref[:H, :],
                  preferred_element_type=jnp.float32)                   # (B, H)
    enc_flat = enc.reshape(B * S, H2)                                    # free leading-dim merge
    e_e = jnp.dot(enc_flat, attn_w_ref[H:, :],
                  preferred_element_type=jnp.float32).reshape(B, S, H)   # (B, S, H)
    energy = jnp.tanh(e_e + e_h[:, None, :] + attn_b_ref[...])           # (B, S, H)

    # scores = energy @ v  -> (B, S), stabilized softmax over the seq axis
    scores = jnp.sum(energy * v_ref[...], axis=-1)                       # (B, S)
    scores = scores - jnp.max(scores, axis=1, keepdims=True)
    e = jnp.exp(scores)
    probs = e / jnp.sum(e, axis=1, keepdims=True)                        # (B, S)

    # weighted context = bmm(probs, enc) -> (B, 2H)   (VPU mul + sublane reduce)
    ctx = jnp.sum(probs[:, :, None] * enc, axis=1)                       # (B, 2H)

    # ---- single-step LSTM (PyTorch gate order i, f, g, o): ONE K=128 matmul ----
    rnn_in = jnp.concatenate([ctx, emb, h], axis=1)                      # (B, 2H+E+H)
    gates = (jnp.dot(rnn_in, w_rnn_ref[...],
                     preferred_element_type=jnp.float32)
             + b_rnn_ref[...])                                           # (B, 4H)
    i_g = jax.nn.sigmoid(gates[:, 0 * H:1 * H])
    f_g = jax.nn.sigmoid(gates[:, 1 * H:2 * H])
    g_g = jnp.tanh(gates[:, 2 * H:3 * H])
    o_g = jax.nn.sigmoid(gates[:, 3 * H:4 * H])
    c_new = f_g * c + i_g * g_g
    h_new = o_g * jnp.tanh(c_new)

    # ---- fc over [outputs ; weighted ; embedding]: ONE K=128 matmul ----
    fc_in = jnp.concatenate([h_new, ctx, emb], axis=1)                   # (B, 3H+E)
    pred = (jnp.dot(fc_in, fc_w_ref[...],
                    preferred_element_type=jnp.float32)
            + fc_b_ref[...])                                             # (B, OUT)

    # ---- lane-dense packed store: [pred ‖ h_new ‖ c_new] = (B, OUT+2H) ----
    out_ref[...] = jnp.concatenate([pred, h_new, c_new], axis=1)


def init_params(key, input_size, embedding_size, hidden_size, output_size):
    ks = jax.random.split(key, 10)
    H, E, OUT = hidden_size, embedding_size, output_size
    s = 0.05
    return {
        'embedding': jax.random.normal(ks[0], (input_size, E), jnp.float32) * s,
        # attention.attn: Linear(3H -> H), torch weight is (H, 3H); store transposed (3H, H)
        'attn_w': jax.random.normal(ks[1], (3 * H, H), jnp.float32) * s,
        'attn_b': jax.random.normal(ks[2], (H,), jnp.float32) * s,
        # attention.v: Linear(H -> 1, bias=False); store as (H,)
        'v_w': jax.random.normal(ks[3], (H,), jnp.float32) * s,
        # rnn: LSTM(2H+E -> H); torch weight_ih_l0 is (4H, 2H+E); store transposed
        'w_ih': jax.random.normal(ks[4], (2 * H + E, 4 * H), jnp.float32) * s,
        'b_ih': jax.random.normal(ks[5], (4 * H,), jnp.float32) * s,
        'w_hh': jax.random.normal(ks[6], (H, 4 * H), jnp.float32) * s,
        'b_hh': jax.random.normal(ks[7], (4 * H,), jnp.float32) * s,
        # fc: Linear(3H+E -> OUT); store transposed (3H+E, OUT)
        'fc_w': jax.random.normal(ks[8], (3 * H + E, OUT), jnp.float32) * s,
        'fc_b': jax.random.normal(ks[9], (OUT,), jnp.float32) * s,
    }


def decoder_forward_pallas(x_tokens, encoder_states, hidden, cell, params,
                           hidden_size, embedding_size, output_size):
    H, E, OUT = hidden_size, embedding_size, output_size
    S, B, _ = encoder_states.shape

    # glue: embedding lookup + layout permute + weight stacking (no per-slice DMAs)
    emb = jnp.take(params['embedding'], x_tokens, axis=0)                # (B, E)
    # TODO(synk): nn.Dropout(p) is implemented as identity (eval/inference mode).
    enc_b = jnp.transpose(encoder_states, (1, 0, 2))                     # (B, S, 2H)

    attn_w = params['attn_w']                                            # (3H, H)
    attn_b = params['attn_b'].reshape(1, H)
    v = params['v_w'].reshape(1, H)
    w_rnn = jnp.concatenate([params['w_ih'], params['w_hh']], axis=0)    # (2H+E+H, 4H)
    b_rnn = (params['b_ih'] + params['b_hh']).reshape(1, 4 * H)
    fc_w = params['fc_w']                                                # (3H+E, OUT)
    fc_b = params['fc_b'].reshape(1, OUT)

    vmem_spec = pl.BlockSpec(memory_space=pltpu.MemorySpace.VMEM)
    packed = pl.pallas_call(
        decoder_step_kernel,
        out_shape=jax.ShapeDtypeStruct((B, OUT + 2 * H), jnp.float32),
        in_specs=[vmem_spec] * 11,
        out_specs=vmem_spec,
    )(emb, enc_b, hidden, cell, attn_w, attn_b, v, w_rnn, b_rnn, fc_w, fc_b)

    preds = packed[:, :OUT]
    h_new = packed[:, OUT:OUT + H]
    c_new = packed[:, OUT + H:]
    return preds, h_new, c_new


def decoder_forward_ref(x_tokens, encoder_states, hidden, cell, params, hidden_size):
    """Pure-JAX reference mirroring the PyTorch forward (eval mode)."""
    H = hidden_size
    emb = jnp.take(params['embedding'], x_tokens, axis=0)                # (B, E)
    enc_b = jnp.transpose(encoder_states, (1, 0, 2))                     # (B, S, 2H)
    S = enc_b.shape[1]
    hid_rep = jnp.broadcast_to(hidden[:, None, :], (hidden.shape[0], S, H))
    cat = jnp.concatenate([hid_rep, enc_b], axis=2)                      # (B, S, 3H)
    energy = jnp.tanh(cat @ params['attn_w'] + params['attn_b'])         # (B, S, H)
    scores = jnp.einsum('bsh,h->bs', energy, params['v_w'])              # (B, S)
    probs = jax.nn.softmax(scores, axis=1)
    ctx = jnp.einsum('bs,bsk->bk', probs, enc_b)                         # (B, 2H)
    rnn_in = jnp.concatenate([ctx, emb], axis=1)                         # (B, 2H+E)
    gates = rnn_in @ params['w_ih'] + params['b_ih'] + hidden @ params['w_hh'] + params['b_hh']
    i_g = jax.nn.sigmoid(gates[:, 0 * H:1 * H])
    f_g = jax.nn.sigmoid(gates[:, 1 * H:2 * H])
    g_g = jnp.tanh(gates[:, 2 * H:3 * H])
    o_g = jax.nn.sigmoid(gates[:, 3 * H:4 * H])
    c_new = f_g * cell + i_g * g_g
    h_new = o_g * jnp.tanh(c_new)
    fc_in = jnp.concatenate([h_new, ctx, emb], axis=1)                   # (B, 3H+E)
    preds = fc_in @ params['fc_w'] + params['fc_b']
    return preds, h_new, c_new


if __name__ == "__main__":
    # small shapes consistent with the module's forward
    # (OUT + 2H = 128 so the packed output is exactly one lane-dense slab)
    B, S, H, E = 16, 8, 32, 32
    INPUT_SIZE, OUTPUT_SIZE = 50, 64

    key = jax.random.PRNGKey(0)
    kp, kx, ke, kh, kc = jax.random.split(key, 5)

    params = init_params(kp, INPUT_SIZE, E, H, OUTPUT_SIZE)
    x_tokens = jax.random.randint(kx, (B,), 0, INPUT_SIZE)                     # (B,)
    encoder_states = jax.random.normal(ke, (S, B, 2 * H), jnp.float32)         # (S, B, 2H)
    hidden = jax.random.normal(kh, (B, H), jnp.float32)
    cell = jax.random.normal(kc, (B, H), jnp.float32)

    preds, h_new, c_new = decoder_forward_pallas(
        x_tokens, encoder_states, hidden, cell, params, H, E, OUTPUT_SIZE)
    jax.block_until_ready((preds, h_new, c_new))

    # correctness check vs pure-JAX reference
    preds_r, h_r, c_r = decoder_forward_ref(
        x_tokens, encoder_states, hidden, cell, params, H)
    assert jnp.allclose(preds, preds_r, atol=1e-4, rtol=1e-4)
    assert jnp.allclose(h_new, h_r, atol=1e-4, rtol=1e-4)
    assert jnp.allclose(c_new, c_r, atol=1e-4, rtol=1e-4)

    print("KERNEL_OK")
</pallas_src>

<mosaic_0001>
module attributes {stable_mosaic.version = 11 : i64} {
  func.func @decoder_step_kernel(%arg0: memref<16x32xf32, #tpu.memory_space<vmem>>, %arg1: memref<16x8x64xf32, #tpu.memory_space<vmem>>, %arg2: memref<16x32xf32, #tpu.memory_space<vmem>>, %arg3: memref<16x32xf32, #tpu.memory_space<vmem>>, %arg4: memref<96x32xf32, #tpu.memory_space<vmem>>, %arg5: memref<1x32xf32, #tpu.memory_space<vmem>>, %arg6: memref<1x32xf32, #tpu.memory_space<vmem>>, %arg7: memref<128x128xf32, #tpu.memory_space<vmem>>, %arg8: memref<1x128xf32, #tpu.memory_space<vmem>>, %arg9: memref<128x64xf32, #tpu.memory_space<vmem>>, %arg10: memref<1x64xf32, #tpu.memory_space<vmem>>, %arg11: memref<16x128xf32, #tpu.memory_space<vmem>>) attributes {dimension_semantics = [], scalar_prefetch = 0 : i64, scratch_operands = 0 : i64, tpu.core_type = #tpu.core_type<tc>} {
    %c0 = arith.constant 0 : index
    %c0_0 = arith.constant 0 : index
    %0 = vector.load %arg0[%c0, %c0_0] : memref<16x32xf32, #tpu.memory_space<vmem>>, vector<16x32xf32>
    %c0_1 = arith.constant 0 : index
    %c0_2 = arith.constant 0 : index
    %c0_3 = arith.constant 0 : index
    %1 = vector.load %arg1[%c0_1, %c0_2, %c0_3] : memref<16x8x64xf32, #tpu.memory_space<vmem>>, vector<16x8x64xf32>
    %c0_4 = arith.constant 0 : index
    %c0_5 = arith.constant 0 : index
    %2 = vector.load %arg2[%c0_4, %c0_5] : memref<16x32xf32, #tpu.memory_space<vmem>>, vector<16x32xf32>
    %c0_6 = arith.constant 0 : index
    %c0_7 = arith.constant 0 : index
    %3 = vector.load %arg3[%c0_6, %c0_7] : memref<16x32xf32, #tpu.memory_space<vmem>>, vector<16x32xf32>
    %c0_8 = arith.constant 0 : index
    %c0_9 = arith.constant 0 : index
    %4 = vector.load %arg4[%c0_8, %c0_9] : memref<96x32xf32, #tpu.memory_space<vmem>>, vector<32x32xf32>
    %cst = arith.constant dense<0.000000e+00> : vector<16x32xf32>
    %5 = tpu.matmul %2, %4, %cst {dimension_numbers = #tpu.dot_dimension_numbers<[1], [0], [0], [1], [0, 0, 1, 1], [], []>} : vector<16x32xf32>, vector<32x32xf32>, vector<16x32xf32> -> vector<16x32xf32>
    %6 = vector.shape_cast %1 : vector<16x8x64xf32> to vector<128x64xf32>
    %c32 = arith.constant 32 : index
    %c0_10 = arith.constant 0 : index
    %7 = vector.load %arg4[%c32, %c0_10] : memref<96x32xf32, #tpu.memory_space<vmem>>, vector<64x32xf32>
    %cst_11 = arith.constant dense<0.000000e+00> : vector<128x32xf32>
    %8 = tpu.matmul %6, %7, %cst_11 {dimension_numbers = #tpu.dot_dimension_numbers<[1], [0], [0], [1], [0, 0, 1, 1], [], []>} : vector<128x64xf32>, vector<64x32xf32>, vector<128x32xf32> -> vector<128x32xf32>
    %9 = vector.shape_cast %8 : vector<128x32xf32> to vector<16x8x32xf32>
    %10 = vector.shape_cast %5 : vector<16x32xf32> to vector<16x1x32xf32>
    %11 = vector.broadcast %10 : vector<16x1x32xf32> to vector<16x8x32xf32>
    %12 = arith.addf %9, %11 : vector<16x8x32xf32>
    %c0_12 = arith.constant 0 : index
    %c0_13 = arith.constant 0 : index
    %13 = vector.load %arg5[%c0_12, %c0_13] : memref<1x32xf32, #tpu.memory_space<vmem>>, vector<1x32xf32>
    %14 = vector.shape_cast %13 : vector<1x32xf32> to vector<1x1x32xf32>
    %15 = vector.broadcast %14 : vector<1x1x32xf32> to vector<16x8x32xf32>
    %16 = arith.addf %12, %15 : vector<16x8x32xf32>
    %17 = math.tanh %16 : vector<16x8x32xf32>
    %c0_14 = arith.constant 0 : index
    %c0_15 = arith.constant 0 : index
    %18 = vector.load %arg6[%c0_14, %c0_15] : memref<1x32xf32, #tpu.memory_space<vmem>>, vector<1x32xf32>
    %19 = vector.shape_cast %18 : vector<1x32xf32> to vector<1x1x32xf32>
    %20 = vector.broadcast %19 : vector<1x1x32xf32> to vector<16x8x32xf32>
    %21 = arith.mulf %17, %20 : vector<16x8x32xf32>
    %cst_16 = arith.constant dense<0.000000e+00> : vector<16x8xf32>
    %22 = vector.multi_reduction <add>, %21, %cst_16 [2] : vector<16x8x32xf32> to vector<16x8xf32>
    %cst_17 = arith.constant dense<0xFF800000> : vector<16xf32>
    %23 = vector.multi_reduction <maximumf>, %22, %cst_17 [1] : vector<16x8xf32> to vector<16xf32>
    %24 = vector.shape_cast %23 : vector<16xf32> to vector<16x1xf32>
    %25 = vector.broadcast %24 : vector<16x1xf32> to vector<16x8xf32>
    %26 = arith.subf %22, %25 : vector<16x8xf32>
    %27 = math.exp %26 : vector<16x8xf32>
    %cst_18 = arith.constant dense<0.000000e+00> : vector<16xf32>
    %28 = vector.multi_reduction <add>, %27, %cst_18 [1] : vector<16x8xf32> to vector<16xf32>
    %29 = vector.shape_cast %28 : vector<16xf32> to vector<16x1xf32>
    %30 = vector.broadcast %29 : vector<16x1xf32> to vector<16x8xf32>
    %31 = arith.divf %27, %30 : vector<16x8xf32>
    %32 = vector.shape_cast %31 : vector<16x8xf32> to vector<16x8x1xf32>
    %33 = vector.broadcast %32 : vector<16x8x1xf32> to vector<16x8x64xf32>
    %34 = arith.mulf %33, %1 : vector<16x8x64xf32>
    %cst_19 = arith.constant dense<0.000000e+00> : vector<16x64xf32>
    %35 = vector.multi_reduction <add>, %34, %cst_19 [1] : vector<16x8x64xf32> to vector<16x64xf32>
    %36 = tpu.concatenate %35, %0, %2 in 1 : vector<16x64xf32>, vector<16x32xf32>, vector<16x32xf32> -> vector<16x128xf32>
    %c0_20 = arith.constant 0 : index
    %c0_21 = arith.constant 0 : index
    %37 = vector.load %arg7[%c0_20, %c0_21] : memref<128x128xf32, #tpu.memory_space<vmem>>, vector<128x128xf32>
    %cst_22 = arith.constant dense<0.000000e+00> : vector<16x128xf32>
    %38 = tpu.matmul %36, %37, %cst_22 {dimension_numbers = #tpu.dot_dimension_numbers<[1], [0], [0], [1], [0, 0, 1, 1], [], []>} : vector<16x128xf32>, vector<128x128xf32>, vector<16x128xf32> -> vector<16x128xf32>
    %c0_23 = arith.constant 0 : index
    %c0_24 = arith.constant 0 : index
    %39 = vector.load %arg8[%c0_23, %c0_24] : memref<1x128xf32, #tpu.memory_space<vmem>>, vector<1x128xf32>
    %40 = vector.broadcast %39 : vector<1x128xf32> to vector<16x128xf32>
    %41 = arith.addf %38, %40 : vector<16x128xf32>
    %42 = vector.extract_strided_slice %41 {offsets = [0, 0], sizes = [16, 32], strides = [1, 1]} : vector<16x128xf32> to vector<16x32xf32>
    %43 = arith.negf %42 : vector<16x32xf32>
    %44 = math.exp %43 : vector<16x32xf32>
    %cst_25 = arith.constant 1.000000e+00 : f32
    %45 = vector.broadcast %cst_25 : f32 to vector<16x32xf32>
    %46 = arith.addf %45, %44 : vector<16x32xf32>
    %47 = arith.divf %45, %46 : vector<16x32xf32>
    %48 = vector.extract_strided_slice %41 {offsets = [0, 32], sizes = [16, 32], strides = [1, 1]} : vector<16x128xf32> to vector<16x32xf32>
    %49 = arith.negf %48 : vector<16x32xf32>
    %50 = math.exp %49 : vector<16x32xf32>
    %cst_26 = arith.constant 1.000000e+00 : f32
    %51 = vector.broadcast %cst_26 : f32 to vector<16x32xf32>
    %52 = arith.addf %51, %50 : vector<16x32xf32>
    %53 = arith.divf %51, %52 : vector<16x32xf32>
    %54 = vector.extract_strided_slice %41 {offsets = [0, 64], sizes = [16, 32], strides = [1, 1]} : vector<16x128xf32> to vector<16x32xf32>
    %55 = math.tanh %54 : vector<16x32xf32>
    %56 = vector.extract_strided_slice %41 {offsets = [0, 96], sizes = [16, 32], strides = [1, 1]} : vector<16x128xf32> to vector<16x32xf32>
    %57 = arith.negf %56 : vector<16x32xf32>
    %58 = math.exp %57 : vector<16x32xf32>
    %cst_27 = arith.constant 1.000000e+00 : f32
    %59 = vector.broadcast %cst_27 : f32 to vector<16x32xf32>
    %60 = arith.addf %59, %58 : vector<16x32xf32>
    %61 = arith.divf %59, %60 : vector<16x32xf32>
    %62 = arith.mulf %53, %3 : vector<16x32xf32>
    %63 = arith.mulf %47, %55 : vector<16x32xf32>
    %64 = arith.addf %62, %63 : vector<16x32xf32>
    %65 = math.tanh %64 : vector<16x32xf32>
    %66 = arith.mulf %61, %65 : vector<16x32xf32>
    %67 = tpu.concatenate %66, %35, %0 in 1 : vector<16x32xf32>, vector<16x64xf32>, vector<16x32xf32> -> vector<16x128xf32>
    %c0_28 = arith.constant 0 : index
    %c0_29 = arith.constant 0 : index
    %68 = vector.load %arg9[%c0_28, %c0_29] : memref<128x64xf32, #tpu.memory_space<vmem>>, vector<128x64xf32>
    %cst_30 = arith.constant dense<0.000000e+00> : vector<16x64xf32>
    %69 = tpu.matmul %67, %68, %cst_30 {dimension_numbers = #tpu.dot_dimension_numbers<[1], [0], [0], [1], [0, 0, 1, 1], [], []>} : vector<16x128xf32>, vector<128x64xf32>, vector<16x64xf32> -> vector<16x64xf32>
    %c0_31 = arith.constant 0 : index
    %c0_32 = arith.constant 0 : index
    %70 = vector.load %arg10[%c0_31, %c0_32] : memref<1x64xf32, #tpu.memory_space<vmem>>, vector<1x64xf32>
    %71 = vector.broadcast %70 : vector<1x64xf32> to vector<16x64xf32>
    %72 = arith.addf %69, %71 : vector<16x64xf32>
    %73 = tpu.concatenate %72, %66, %64 in 1 : vector<16x64xf32>, vector<16x32xf32>, vector<16x32xf32> -> vector<16x128xf32>
    %c0_33 = arith.constant 0 : index
    %c0_34 = arith.constant 0 : index
    %74 = vector.load %arg11[%c0_33, %c0_34] : memref<16x128xf32, #tpu.memory_space<vmem>>, vector<16x128xf32>
    tpu.vector_store %arg11[%c0_33, %c0_34], %73 {strides = array<i32>} : memref<16x128xf32, #tpu.memory_space<vmem>>, vector<16x128xf32>,
    return
  }
}

</mosaic_0001>

<bundles_post_ra>
// kernel: tpu_custom_call.1
= control target key start
LH: loop header
LB: loop body
LE: loop exit
PB: predicated region body
PF: predicated region fallthrough
CT: control target
= control target key end

     0   :  { %16 = vsyncpa [#allocation3], 0  ;;  %s2707_s0 = inlined_call_operand.hbm [shape: f32[16,32], index: 0, kind: input, shape index: {}]   ;;  %s2708_s1 = inlined_call_operand.vmem [shape: f32[16,8,64], index: 1, kind: input, shape index: {}]   ;;  %s2709_s2 = inlined_call_operand.hbm [shape: f32[16,32], index: 2, kind: input, shape index: {}]   ;;  %s2710_s3 = inlined_call_operand.hbm [shape: f32[16,32], index: 3, kind: input, shape index: {}]   ;;  %s2711_s4 = inlined_call_operand.vmem [shape: f32[96,32], index: 4, kind: input, shape index: {}]   ;;  %s2712_s5 = inlined_call_operand.vmem [shape: f32[1,32], index: 5, kind: input, shape index: {}]   ;;  %s2713_s6 = inlined_call_operand.vmem [shape: f32[1,32], index: 6, kind: input, shape index: {}]   ;;  %s2714_s7 = inlined_call_operand.vmem [shape: f32[128,128], index: 7, kind: input, shape index: {}]   ;;  %s2715_s8 = inlined_call_operand.vmem [shape: f32[1,128], index: 8, kind: input, shape index: {}]   ;;  %s2716_s9 = inlined_call_operand.vmem [shape: f32[128,64], index: 9, kind: input, shape index: {}]   ;;  %s2717_s10 = inlined_call_operand.vmem [shape: f32[1,64], index: 10, kind: input, shape index: {}]   ;;  %s2718_s11 = inlined_call_operand.hbm [shape: f32[16,128], index: 11, kind: output, shape index: {}]  }
   0x1   :  { %17 = vsyncpa [#allocation6], 0 }
   0x2   :  { %18 = vsyncpa [#allocation4], 0  ;;  %s38_s19 = sshll.u32 %s2709_s2, 4  ;;  %s1740_s20 = smov [#allocation5]   ;;  %s39_s19 = int_to_ptr.hbm [resolvable:$true] %s38_s19 }
   0x3   :  { %s40_s21 = sshll.u32 %s1740_s20, 4  ;;  %s23_s24 = sshll.u32 %s2707_s0, 4  ;;  %s41_s21 = int_to_ptr.vmem [resolvable:$true] %s40_s21  ;;  %s24_s24 = int_to_ptr.hbm [resolvable:$true] %s23_s24 }
   0x4   :  { %s1741_s25 = smov 128   ;;  %s1742_s26 = smov 8  }
   0x5   :  { %46 = dma.hbm_to_vmem [thread:$0]  %s39_s19, 256, %s41_s21, [#allocation6], %s1741_s25, %s1741_s25, %s1742_s26  }
   0x6   :  { %s1743_s27 = smov [#allocation2]   ;;  %s51_s2 = sshll.u32 %s2710_s3, 4  ;;  %s52_s2 = int_to_ptr.hbm [resolvable:$true] %s51_s2 }
   0x7   :  { %s25_s28 = sshll.u32 %s1743_s27, 4  ;;  %s1744_s0 = smov [#allocation7]   ;;  %s26_s28 = int_to_ptr.vmem [resolvable:$true] %s25_s28 }
   0x8   :  { %31 = dma.hbm_to_vmem [thread:$0]  %s24_s24, 256, %s26_s28, [#allocation3], %s1741_s25, %s1741_s25, %s1742_s26  }
   0x9   :  { %s53_s12 = sshll.u32 %s1744_s0, 4  ;;  %s54_s12 = int_to_ptr.vmem [resolvable:$true] %s53_s12 }
   0xa   :  { %59 = dma.hbm_to_vmem [thread:$0]  %s52_s2, 256, %s54_s12, [#allocation6], %s1741_s25, %s1741_s25, %s1742_s26  }
   0xb   :  { %1734 = dma.done.wait [#allocation3], 256  }
   0xc   :  { %1735 = vsyncadd [#allocation3], 4294967040 }
   0xd   :  { %1736 = dma.done.wait [#allocation6], 512  }
   0xe   :  { %1737 = vsyncadd [#allocation6], 4294966784  ;;  %v111_v0 = vld [vmem:[%s2711_s4 + $0x18] sm:$0xff]  ;;  %v110_v2 = vld [vmem:[%s2711_s4 + $0x10] sm:$0xff]  ;;  %vm2719_vm0 = vcmask 261120   ;;  %vm150_vm1 = vcmask 523264  }
   0xf   :  { %v149_v1 = vld [vmem:[%s2711_s4 + $0x58] sm:$0xff]  ;;  %131 = vmatpush.msra.mxu0 %v111_v0  ;;  %v148_v3 = vld [vmem:[%s2711_s4 + $0x50] sm:$0xff]  ;;  %v109_v4 = vld [vmem:[%s2711_s4 + $0x8] sm:$0xff]  ;;  %vm466_vm2 = vcmask 1041409   ;;  %vm468_vm3 = vcmask 1042434   ;;  %vm470_vm4 = vcmask 1043459  }
  0x10   :  { %1465 = vmatpush.msra.mxu1 %v149_v1  ;;  %1466 = vmatpush.msra.mxu2 %v149_v1  ;;  %v147_v5 = vld [vmem:[%s2711_s4 + $0x48] sm:$0xff]  ;;  %v108_v6 = vld [vmem:[%s2711_s4] sm:$0xff]  ;;  %v104_v8 = vld [vmem:[#allocation5] sm:$0xff]  ;;  %vm2723_vm5 = vcmask 1044484   ;;  %vm2722_vm6 = vcmask 1045509   ;;  %vm2721_vm7 = vcmask 1046534  }
  0x11   :  { %132 = vmatpush.msra.mxu0 %v110_v2  ;;  %v146_v7 = vld [vmem:[%s2711_s4 + $0x40] sm:$0xff]  ;;  %v145_v9 = vld [vmem:[%s2711_s4 + $0x38] sm:$0xff]  ;;  %v144_v10 = vld [vmem:[%s2711_s4 + $0x30] sm:$0xff]  ;;  %vm2720_vm8 = vcmask 1047559   ;;  %vm489_vm9 = vcmask 64512   ;;  %s1748_s29 = smov 32  }
  0x12   :  { %1467 = vmatpush.msra.mxu1 %v148_v3  ;;  %1468 = vmatpush.msra.mxu2 %v148_v3  ;;  %v143_v11 = vld [vmem:[%s2711_s4 + $0x28] sm:$0xff]  ;;  %v142_v12 = vld [vmem:[%s2711_s4 + $0x20] sm:$0xff]  ;;  %v105_v13 = vld [vmem:[#allocation5 + $0x8] sm:$0xff]  ;;  %s1749_s18 = smov [#allocation8]   ;;  %s1431_s4 = sshll.u32 %s2718_s11, 4  ;;  %s1432_s4 = int_to_ptr.hbm [resolvable:$true] %s1431_s4 }
  0x13   :  { %133 = vmatpush.msra.mxu0 %v109_v4  ;;  %v93_v14 = vld [vmem:[%s2708_s1 + $0x28] sm:$0xff]  ;;  %v100_v15 = vld [vmem:[%s2708_s1 + $0x60] sm:$0xff]  ;;  %v94_v17 = vld [vmem:[%s2708_s1 + $0x30] sm:$0xff] }
  0x14   :  { %1469 = vmatpush.msra.mxu1 %v147_v5  ;;  %1470 = vmatpush.msra.mxu2 %v147_v5  ;;  %v88_v16 = vld [vmem:[%s2708_s1] sm:$0xff]  ;;  %v101_v18 = vld [vmem:[%s2708_s1 + $0x68] sm:$0xff]  ;;  %v95_v20 = vld [vmem:[%s2708_s1 + $0x38] sm:$0xff] }
  0x15   :  { %134 = vmatpush.msra.mxu0 %v108_v6  ;;  %v89_v19 = vld [vmem:[%s2708_s1 + $0x8] sm:$0xff]  ;;  %v102_v21 = vld [vmem:[%s2708_s1 + $0x70] sm:$0xff]  ;;  %v96_v23 = vld [vmem:[%s2708_s1 + $0x40] sm:$0xff] }
  0x16   :  { %1471 = vmatpush.msra.mxu1 %v146_v7  ;;  %1472 = vmatpush.msra.mxu2 %v146_v7  ;;  %v90_v22 = vld [vmem:[%s2708_s1 + $0x10] sm:$0xff]  ;;  %v103_v24 = vld [vmem:[%s2708_s1 + $0x78] sm:$0xff]  ;;  %v97_v26 = vld [vmem:[%s2708_s1 + $0x48] sm:$0xff] }
  0x17   :  { %1445 = vmatmul.msk.f32.vlgmr.msra.gmra.mxu0 %vm2719_vm0, %v104_v8  ;;  %v91_v25 = vld [vmem:[%s2708_s1 + $0x18] sm:$0xff]  ;;  %v92_v27 = vld [vmem:[%s2708_s1 + $0x20] sm:$0xff]  ;;  %v98_v28 = vld [vmem:[%s2708_s1 + $0x50] sm:$0xff] }
  0x18   :  { %207 = vmatpush.msrb.mxu0 %v149_v1  ;;  %1473 = vmatpush.msra.mxu1 %v145_v9  ;;  %v99_v29 = vld [vmem:[%s2708_s1 + $0x58] sm:$0xff]  ;;  %v1938_v34 = vld [vmem:[%s2712_s5] ss:$0 sm:$0xff]  ;;  %s1746_s5 = smov 64  }
  0x19   :  { %1474 = vmatpush.msra.mxu2 %v145_v9  ;;  %v1946_v46 = vld [vmem:[%s2713_s6] ss:$0 sm:$0xff]  ;;  %s1747_s6 = smov 96  }
  0x1a   :  { %208 = vmatpush.msrb.mxu0 %v148_v3  ;;  %1475 = vmatpush.msra.mxu1 %v144_v10 }
  0x1b   :  { %1476 = vmatpush.msra.mxu2 %v144_v10 }
  0x1c   :  { %209 = vmatpush.msrb.mxu0 %v147_v5  ;;  %1477 = vmatpush.msra.mxu1 %v143_v11 }
  0x1d   :  { %1478 = vmatpush.msra.mxu2 %v143_v11 }
  0x1e   :  { %210 = vmatpush.msrb.mxu0 %v146_v7  ;;  %1479 = vmatpush.msra.mxu1 %v142_v12 }
  0x1f   :  { %1480 = vmatpush.msra.mxu2 %v142_v12  ;;  %1446 = vmatmul.msk.f32.gmra.mxu0 %vm2719_vm0, %v105_v13 }
  0x20   :  { %211 = vmatpush.msrb.mxu0 %v145_v9  ;;  %1452 = vmatmul.msk.f32.vlgmr.msra.gmra.mxu1 %vm150_vm1, %v93_v14 }
  0x21   :  { %1459 = vmatmul.msk.f32.vlgmr.msra.gmra.mxu2 %vm150_vm1, %v100_v15 }
  0x22   :  { %212 = vmatpush.msrb.mxu0 %v144_v10 }
  0x24   :  { %213 = vmatpush.msrb.mxu0 %v143_v11 }
  0x26   :  { %214 = vmatpush.msrb.mxu0 %v142_v12 }
  0x27   :  { %1447 = vmatmul.msk.f32.vlgmr.msrb.gmra.mxu0 %vm150_vm1, %v88_v16 }
  0x28   :  { %1453 = vmatmul.msk.f32.gmra.mxu1 %vm150_vm1, %v94_v17 }
  0x29   :  { %1460 = vmatmul.msk.f32.gmra.mxu2 %vm150_vm1, %v101_v18 }
  0x2f   :  { %1448 = vmatmul.msk.f32.gmra.mxu0 %vm150_vm1, %v89_v19 }
  0x30   :  { %1454 = vmatmul.msk.f32.gmra.mxu1 %vm150_vm1, %v95_v20 }
  0x31   :  { %1461 = vmatmul.msk.f32.gmra.mxu2 %vm150_vm1, %v102_v21 }
  0x37   :  { %1449 = vmatmul.msk.f32.gmra.mxu0 %vm150_vm1, %v90_v22 }
  0x38   :  { %1455 = vmatmul.msk.f32.gmra.mxu1 %vm150_vm1, %v96_v23 }
  0x39   :  { %1462 = vmatmul.msk.f32.gmra.mxu2 %vm150_vm1, %v103_v24 }
  0x3f   :  { %1450 = vmatmul.msk.f32.gmra.mxu0 %vm150_vm1, %v91_v25 }
  0x40   :  { %1456 = vmatmul.msk.f32.gmra.mxu1 %vm150_vm1, %v97_v26 }
  0x47   :  { %1451 = vmatmul.msk.f32.gmra.mxu0 %vm150_vm1, %v92_v27 }
  0x48   :  { %1457 = vmatmul.msk.f32.gmra.mxu1 %vm150_vm1, %v98_v28 }
  0x50   :  { %1458 = vmatmul.msk.f32.gmra.mxu1 %vm150_vm1, %v99_v29 }
  0x94   :  { %v1930_v30 = vpop.f32.mrf.mxu0 }
  0x95   :  { %v270_v31 = vrot.slane %v1930_v30, 5  ;;  %v280_v40 = vperm.slane %v1930_v30, 0  ;;  %v271_v48 = vrot.slane %v1930_v30, 6  ;;  %v272_v50 = vrot.slane %v1930_v30, 7 }
  0x96   :  { %v266_v62 = vrot.slane %v1930_v30, 1  ;;  %v267_v63 = vrot.slane %v1930_v30, 2  ;;  %v268_v15 = vrot.slane %v1930_v30, 3 }
  0x97   :  { %v285_v33 = vperm.slane %v270_v31, 0  ;;  %v286_v53 = vperm.slane %v271_v48, 0  ;;  %v287_v56 = vperm.slane %v272_v50, 0 }
  0x98   :  { %v281_v5 = vperm.slane %v266_v62, 0  ;;  %v282_v6 = vperm.slane %v267_v63, 0  ;;  %v283_v24 = vperm.slane %v268_v15, 0 }
  0x9c   :  { %v1933_v32 = vpop.f32.mrf.mxu0 }
  0x9d   :  { %v231_v35 = vpop.f32.mrf.mxu1  ;;  %v276_v37 = vrot.slane %v1933_v32, 4  ;;  %v288_v8 = vperm.slane %v1933_v32, 0  ;;  %v273_v18 = vrot.slane %v1933_v32, 1 }
  0x9e   :  { %v317_v36 = vadd.f32 %v285_v33, %v231_v35  ;;  %v279_v35 = vrot.slane %v1933_v32, 7 }
  0x9f   :  { %v292_v39 = vperm.slane %v276_v37, 0  ;;  %v289_v27 = vperm.slane %v273_v18, 0  ;;  %v269_v37 = vrot.slane %v1930_v30, 4 }
  0xa0   :  { %v337_v38 = vadd.f32 %v1938_v34, %v317_v36 }
  0xa1   :  { %v284_v50 = vperm.slane %v269_v37, 0 }
  0xa2   :  { %1508 = vtanh.f32 %v337_v38 }
  0xa4   :  { %v252_v41 = vpop.f32.mrf.mxu2  ;;  %v216_v42 = vpop.f32.mrf.mxu0 }
  0xa5   :  { %v324_v43 = vadd.f32 %v292_v39, %v252_v41  ;;  %v312_v44 = vadd.f32 %v280_v40, %v216_v42  ;;  %v234_v45 = vpop.f32.mrf.mxu1  ;;  %v274_v39 = vrot.slane %v1933_v32, 2  ;;  %v277_v41 = vrot.slane %v1933_v32, 5 }
  0xa6   :  { %v318_v57 = vadd.f32 %v286_v53, %v234_v45 }
  0xa7   :  { %v344_v47 = vadd.f32 %v1938_v34, %v324_v43  ;;  %v332_v51 = vadd.f32 %v1938_v34, %v312_v44  ;;  %v290_v53 = vperm.slane %v274_v39, 0 }
  0xa8   :  { %v1509_v49 = vpop.eup %1508  ;;  %v338_v2 = vadd.f32 %v1938_v34, %v318_v57 }
  0xa9   :  { %1510 = vtanh.f32 %v344_v47  ;;  %v373_v52 = vmul.f32 %v1509_v49, %v1946_v46  ;;  %v295_v49 = vperm.slane %v279_v35, 0 }
  0xaa   :  { %1512 = vtanh.f32 %v332_v51 }
  0xab   :  { %v399_v54 = vsel %vm2719_vm0, %v373_v52, 0.0 }
  0xac   :  { %400 = vadd.xlane.f32.xlu2 %v399_v54  ;;  %v219_v55 = vpop.f32.mrf.mxu0  ;;  %v1954_v59 = vpop.f32.mrf.mxu2  ;;  %v293_v54 = vperm.slane %v277_v41, 0 }
  0xad   :  { %v237_v58 = vpop.f32.mrf.mxu1  ;;  %v313_v9 = vadd.f32 %v281_v5, %v219_v55 }
  0xae   :  { %v319_v60 = vadd.f32 %v287_v56, %v237_v58 }
  0xaf   :  { %v1511_v61 = vpop.eup %1510  ;;  %v333_v20 = vadd.f32 %v1938_v34, %v313_v9 }
  0xb0   :  { %v339_v0 = vadd.f32 %v1938_v34, %v319_v60  ;;  %v380_v1 = vmul.f32 %v1511_v61, %v1946_v46  ;;  %v1513_v4 = vpop.eup %1512  ;;  %v325_v61 = vadd.f32 %v293_v54, %v1954_v59 }
  0xb1   :  { %v368_v13 = vmul.f32 %v1513_v4, %v1946_v46 }
  0xb2   :  { %v420_v3 = vsel %vm2719_vm0, %v380_v1, 0.0  ;;  %1514 = vtanh.f32 %v339_v0  ;;  %v278_v0 = vrot.slane %v1933_v32, 6  ;;  %v345_v59 = vadd.f32 %v1938_v34, %v325_v61 }
  0xb3   :  { %421 = vadd.xlane.f32.xlu0 %v420_v3  ;;  %1516 = vtanh.f32 %v338_v2  ;;  %v384_v21 = vsel %vm2719_vm0, %v368_v13, 0.0  ;;  %v275_v2 = vrot.slane %v1933_v32, 3 }
  0xb4   :  { %v222_v7 = vpop.f32.mrf.mxu0  ;;  %v1966_v16 = vpop.f32.mrf.mxu2 }
  0xb5   :  { %v314_v10 = vadd.f32 %v282_v6, %v222_v7  ;;  %v240_v11 = vpop.f32.mrf.mxu1  ;;  %v291_v9 = vperm.slane %v275_v2, 0 }
  0xb6   :  { %v320_v12 = vadd.f32 %v288_v8, %v240_v11  ;;  %v294_v8 = vperm.slane %v278_v0, 0 }
  0xb7   :  { %v334_v14 = vadd.f32 %v1938_v34, %v314_v10 }
  0xb8   :  { %v340_v17 = vadd.f32 %v1938_v34, %v320_v12  ;;  %v1515_v19 = vpop.eup %1514  ;;  %v326_v32 = vadd.f32 %v294_v8, %v1966_v16 }
  0xb9   :  { %1518 = vtanh.f32 %v334_v14  ;;  %v375_v22 = vmul.f32 %v1515_v19, %v1946_v46  ;;  %v1517_v23 = vpop.eup %1516 }
  0xba   :  { %1520 = vtanh.f32 %v340_v17  ;;  %v374_v33 = vmul.f32 %v1517_v23, %v1946_v46  ;;  %v346_v19 = vadd.f32 %v1938_v34, %v326_v32 }
  0xbb   :  { %385 = vadd.xlane.f32.xlu0 %v384_v21  ;;  %v405_v25 = vsel %vm2719_vm0, %v375_v22, 0.0  ;;  %1522 = vtanh.f32 %v333_v20 }
  0xbc   :  { %v225_v26 = vpop.f32.mrf.mxu0  ;;  %406 = vadd.xlane.f32.xlu1 %v405_v25  ;;  %v261_v44 = vpop.f32.mrf.mxu2  ;;  %v402_v45 = vsel %vm2719_vm0, %v374_v33, 0.0 }
  0xbd   :  { %v315_v28 = vadd.f32 %v283_v24, %v225_v26  ;;  %v243_v29 = vpop.f32.mrf.mxu1  ;;  %v327_v55 = vadd.f32 %v295_v49, %v261_v44 }
  0xbe   :  { %v321_v31 = vadd.f32 %v289_v27, %v243_v29 }
  0xbf   :  { %v335_v36 = vadd.f32 %v1938_v34, %v315_v28  ;;  %v1519_v38 = vpop.eup %1518  ;;  %v347_v3 = vadd.f32 %v1938_v34, %v327_v55 }
  0xc0   :  { %v1521_v40 = vpop.eup %1520  ;;  %v341_v42 = vadd.f32 %v1938_v34, %v321_v31  ;;  %v370_v43 = vmul.f32 %v1519_v38, %v1946_v46 }
  0xc1   :  { %1524 = vtanh.f32 %v335_v36  ;;  %v376_v47 = vmul.f32 %v1521_v40, %v1946_v46  ;;  %v1523_v48 = vpop.eup %1522 }
  0xc2   :  { %v390_v30 = vsel %vm2719_vm0, %v370_v43, 0.0  ;;  %1526 = vtanh.f32 %v341_v42  ;;  %v369_v60 = vmul.f32 %v1523_v48, %v1946_v46  ;;  %v448_v42 = vlaneseq }
  0xc3   :  { %403 = vadd.xlane.f32.xlu0 %v402_v45  ;;  %v408_v51 = vsel %vm2719_vm0, %v376_v47, 0.0 }
  0xc4   :  { %v228_v52 = vpop.f32.mrf.mxu0  ;;  %409 = vadd.xlane.f32.xlu2 %v408_v51  ;;  %391 = vadd.xlane.f32.xlu1 %v390_v30  ;;  %v387_v5 = vsel %vm2719_vm0, %v369_v60, 0.0  ;;  %v2026_v43 = vand.u32 127, %v448_v42 }
  0xc5   :  { %v316_v56 = vadd.f32 %v284_v50, %v228_v52  ;;  %v246_v57 = vpop.f32.mrf.mxu1 }
  0xc6   :  { %v322_v58 = vadd.f32 %v290_v53, %v246_v57 }
  0xc7   :  { %v336_v62 = vadd.f32 %v1938_v34, %v316_v56  ;;  %v1525_v63 = vpop.eup %1524 }
  0xc8   :  { %v342_v1 = vadd.f32 %v1938_v34, %v322_v58  ;;  %v371_v4 = vmul.f32 %v1525_v63, %v1946_v46  ;;  %v1527_v6 = vpop.eup %1526 }
  0xc9   :  { %1528 = vtanh.f32 %v336_v62  ;;  %v377_v12 = vmul.f32 %v1527_v6, %v1946_v46 }
  0xca   :  { %1530 = vtanh.f32 %v342_v1  ;;  %v393_v7 = vsel %vm2719_vm0, %v371_v4, 0.0 }
  0xcb   :  { %388 = vadd.xlane.f32.xlu0 %v387_v5  ;;  %1532 = vtanh.f32 %v347_v3  ;;  %v411_v20 = vsel %vm2719_vm0, %v377_v12, 0.0 }
  0xcc   :  { %394 = vadd.xlane.f32.xlu1 %v393_v7  ;;  %1534 = vtanh.f32 %v345_v59 }
  0xcd   :  { %v249_v10 = vpop.f32.mrf.mxu1 }
  0xce   :  { %v323_v11 = vadd.f32 %v291_v9, %v249_v10 }
  0xcf   :  { %v1529_v13 = vpop.eup %1528 }
  0xd0   :  { %v1531_v14 = vpop.eup %1530  ;;  %v343_v15 = vadd.f32 %v1938_v34, %v323_v11  ;;  %v372_v17 = vmul.f32 %v1529_v13, %v1946_v46 }
  0xd1   :  { %v378_v18 = vmul.f32 %v1531_v14, %v1946_v46  ;;  %v1533_v16 = vpop.eup %1532 }
  0xd2   :  { %1536 = vtanh.f32 %v343_v15  ;;  %v396_v21 = vsel %vm2719_vm0, %v372_v17, 0.0  ;;  %v1535_v23 = vpop.eup %1534  ;;  %v383_v24 = vmul.f32 %v1533_v16, %v1946_v46 }
  0xd3   :  { %412 = vadd.xlane.f32.xlu0 %v411_v20  ;;  %v414_v22 = vsel %vm2719_vm0, %v378_v18, 0.0  ;;  %397 = vadd.xlane.f32.xlu2 %v396_v21  ;;  %1538 = vtanh.f32 %v346_v19  ;;  %v381_v26 = vmul.f32 %v1535_v23, %v1946_v46  ;;  %v1745_v21 = vmov 0  }
  0xd4   :  { %415 = vadd.xlane.f32.xlu1 %v414_v22  ;;  %v429_v27 = vsel %vm2719_vm0, %v383_v24, 0.0  ;;  %1493 = vset.pattern.permute.xlu2 %v1745_v21 }
  0xd5   :  { %v423_v31 = vsel %vm2719_vm0, %v381_v26, 0.0  ;;  %1492 = vset.pattern.permute.xlu1 %v1745_v21  ;;  %1491 = vset.pattern.permute.xlu0 %v1745_v21 }
  0xd8   :  { %v1537_v25 = vpop.eup %1536 }
  0xd9   :  { %v379_v34 = vmul.f32 %v1537_v25, %v1946_v46  ;;  %v1539_v29 = vpop.eup %1538 }
  0xda   :  { %v382_v33 = vmul.f32 %v1539_v29, %v1946_v46 }
  0xdb   :  { %430 = vadd.xlane.f32.xlu0 %v429_v27  ;;  %v417_v28 = vsel %vm2719_vm0, %v379_v34, 0.0 }
  0xdc   :  { %418 = vadd.xlane.f32.xlu2 %v417_v28  ;;  %424 = vadd.xlane.f32.xlu1 %v423_v31  ;;  %v426_v35 = vsel %vm2719_vm0, %v382_v33, 0.0 }
  0xe4   :  { %427 = vadd.xlane.f32.xlu2 %v426_v35 }
 0x11f   :  { %v2020_v39 = vpop.xlane.xlu2 %400 }
 0x120   :  { %v455_v54 = vperm.slane %v2020_v39, %v2026_v43 }
 0x126   :  { %v2014_v36 = vpop.xlane.xlu0 %421 }
 0x127   :  { %v462_v9 = vperm.slane %v2014_v36, %v2026_v43 }
 0x12e   :  { %v2016_v37 = vpop.xlane.xlu0 %385 }
 0x12f   :  { %v2018_v38 = vpop.xlane.xlu1 %406  ;;  %v450_v47 = vperm.slane %v2016_v37, %v2026_v43 }
 0x130   :  { %v457_v60 = vperm.slane %v2018_v38, %v2026_v43 }
 0x136   :  { %v2022_v40 = vpop.xlane.xlu0 %403 }
 0x137   :  { %v2024_v41 = vpop.xlane.xlu1 %391  ;;  %v2028_v44 = vpop.xlane.xlu2 %409  ;;  %v456_v57 = vperm.slane %v2022_v40, %v2026_v43 }
 0x138   :  { %v452_v30 = vperm.slane %v2024_v41, %v2026_v43  ;;  %v458_v2 = vperm.slane %v2028_v44, %v2026_v43 }
 0x13e   :  { %v389_v46 = vpop.xlane.xlu0 %388 }
 0x13f   :  { %v451_v45 = vperm.slane %v389_v46, %v2026_v43  ;;  %v2033_v48 = vpop.xlane.xlu1 %394 }
 0x140   :  { %v453_v50 = vperm.slane %v2033_v48, %v2026_v43 }
 0x141   :  { %v467_v49 = vsel %vm466_vm2, %v451_v45, %v450_v47 }
 0x142   :  { %v469_v51 = vsel %vm468_vm3, %v452_v30, %v467_v49 }
 0x143   :  { %v471_v55 = vsel %vm470_vm4, %v453_v50, %v469_v51 }
 0x146   :  { %v398_v52 = vpop.xlane.xlu2 %397  ;;  %v2045_v56 = vpop.xlane.xlu0 %412 }
 0x147   :  { %v454_v53 = vperm.slane %v398_v52, %v2026_v43  ;;  %v2052_v61 = vpop.xlane.xlu1 %415  ;;  %v459_v63 = vperm.slane %v2045_v56, %v2026_v43 }
 0x148   :  { %v460_v4 = vperm.slane %v2052_v61, %v2026_v43 }
 0x149   :  { %v473_v58 = vsel %vm2723_vm5, %v454_v53, %v471_v55  ;;  %v480_v5 = vsel %vm466_vm2, %v459_v63, %v458_v2 }
 0x14a   :  { %v475_v62 = vsel %vm2722_vm6, %v455_v54, %v473_v58  ;;  %v481_v7 = vsel %vm468_vm3, %v460_v4, %v480_v5 }
 0x14b   :  { %v477_v0 = vsel %vm2721_vm7, %v456_v57, %v475_v62 }
 0x14c   :  { %v479_v1 = vsel %vm2720_vm8, %v457_v60, %v477_v0 }
 0x14d   :  { %v490_v3 = vsel %vm489_vm9, %v479_v1, -inf }
 0x14e   :  { %491 = vmax.xlane.f32.xlu1 %v490_v3  ;;  %v2075_v32 = vpop.xlane.xlu0 %430 }
 0x14f   :  { %v2065_v6 = vpop.xlane.xlu2 %418  ;;  %v2073_v10 = vpop.xlane.xlu1 %424  ;;  %v465_v15 = vperm.slane %v2075_v32, %v2026_v43 }
 0x150   :  { %v461_v59 = vperm.slane %v2065_v6, %v2026_v43  ;;  %v463_v12 = vperm.slane %v2073_v10, %v2026_v43 }
 0x152   :  { %v482_v8 = vsel %vm470_vm4, %v461_v59, %v481_v7 }
 0x153   :  { %v483_v11 = vsel %vm2723_vm5, %v462_v9, %v482_v8 }
 0x154   :  { %v484_v17 = vsel %vm2722_vm6, %v463_v12, %v483_v11 }
 0x157   :  { %v2080_v13 = vpop.xlane.xlu2 %427 }
 0x158   :  { %v464_v14 = vperm.slane %v2080_v13, %v2026_v43 }
 0x15a   :  { %v485_v18 = vsel %vm2721_vm7, %v464_v14, %v484_v17 }
 0x15b   :  { %v486_v19 = vsel %vm2720_vm8, %v465_v15, %v485_v18 }
 0x15c   :  { %v493_v20 = vsel %vm489_vm9, %v486_v19, -inf }
 0x15d   :  { %494 = vmax.xlane.f32.xlu2 %v493_v20 }
 0x1c1   :  { %v492_v16 = vpop.xlane.xlu1 %491 }
 0x1c2   :  { %v499_v22 = vperm.slane %v492_v16, 1  ;;  %v498_v23 = vperm.slane %v492_v16, 0  ;;  %v500_v24 = vperm.slane %v492_v16, 2  ;;  %v502_v27 = vperm.slane %v492_v16, 4 }
 0x1c3   :  { %v505_v28 = vperm.slane %v492_v16, 7  ;;  %v501_v29 = vperm.slane %v492_v16, 3  ;;  %v503_v50 = vperm.slane %v492_v16, 5 }
 0x1c4   :  { %v531_v25 = vsub.f32 %v389_v46, %v499_v22  ;;  %v530_v26 = vsub.f32 %v2016_v37, %v498_v23  ;;  %v532_v34 = vsub.f32 %v2024_v41, %v500_v24  ;;  %v534_v42 = vsub.f32 %v398_v52, %v502_v27 }
 0x1c5   :  { %v537_v45 = vsub.f32 %v2018_v38, %v505_v28  ;;  %v533_v47 = vsub.f32 %v2033_v48, %v501_v29  ;;  %v504_v46 = vperm.slane %v492_v16, 6  ;;  %v535_v54 = vsub.f32 %v2020_v39, %v503_v50 }
 0x1c6   :  { %v548_v31 = vmul.f32 1.442695, %v531_v25  ;;  %v546_v33 = vmul.f32 1.442695, %v530_v26  ;;  %v550_v35 = vmul.f32 1.442695, %v532_v34 }
 0x1c7   :  { %v554_v49 = vmul.f32 1.442695, %v534_v42  ;;  %v560_v30 = vmul.f32 1.442695, %v537_v45  ;;  %v552_v41 = vmul.f32 1.442695, %v533_v47  ;;  %v536_v38 = vsub.f32 %v2022_v40, %v504_v46 }
 0x1c8   :  { %1540 = vpow2.f32 %v548_v31  ;;  %v556_v0 = vmul.f32 1.442695, %v535_v54 }
 0x1c9   :  { %1542 = vpow2.f32 %v546_v33  ;;  %v558_v57 = vmul.f32 1.442695, %v536_v38 }
 0x1ca   :  { %1544 = vpow2.f32 %v550_v35 }
 0x1cb   :  { %1546 = vpow2.f32 %v554_v49 }
 0x1cc   :  { %1548 = vpow2.f32 %v560_v30 }
 0x1cd   :  { %1550 = vpow2.f32 %v552_v41 }
 0x1ce   :  { %v2094_v37 = vpop.eup %1540  ;;  %1552 = vpow2.f32 %v558_v57 }
 0x1cf   :  { %v2096_v51 = vpop.eup %1542  ;;  %598 = vperm.xlu1 %1492, %v2094_v37  }
 0x1d0   :  { %v2099_v53 = vpop.eup %1544  ;;  %595 = vperm.xlu0 %1491, %v2096_v51   ;;  %v495_v52 = vpop.xlane.xlu2 %494 }
 0x1d1   :  { %601 = vperm.xlu2 %1493, %v2099_v53   ;;  %v508_v48 = vperm.slane %v495_v52, 2  ;;  %v507_v58 = vperm.slane %v495_v52, 1  ;;  %v511_v62 = vperm.slane %v495_v52, 5  ;;  %v2106_v63 = vpop.eup %1546  ;;  %v506_v1 = vperm.slane %v495_v52, 0 }
 0x1d2   :  { %v2108_v2 = vpop.eup %1548  ;;  %v510_v5 = vperm.slane %v495_v52, 4  ;;  %v509_v9 = vperm.slane %v495_v52, 3  ;;  %v513_v14 = vperm.slane %v495_v52, 7  ;;  %v512_v18 = vperm.slane %v495_v52, 6 }
 0x1d3   :  { %v540_v55 = vsub.f32 %v2052_v61, %v508_v48  ;;  %v2111_v40 = vpop.eup %1550  ;;  %v539_v39 = vsub.f32 %v2045_v56, %v507_v58  ;;  %v543_v61 = vsub.f32 %v2073_v10, %v511_v62  ;;  %v538_v3 = vsub.f32 %v2028_v44, %v506_v1 }
 0x1d4   :  { %v2118_v7 = vpop.eup %1552  ;;  %v542_v10 = vsub.f32 %v2014_v36, %v510_v5  ;;  %v541_v44 = vsub.f32 %v2065_v6, %v509_v9  ;;  %v545_v36 = vsub.f32 %v2075_v32, %v513_v14  ;;  %v544_v6 = vsub.f32 %v2080_v13, %v512_v18 }
 0x1d5   :  { %v566_v60 = vmul.f32 1.442695, %v540_v55  ;;  %v564_v4 = vmul.f32 1.442695, %v539_v39  ;;  %v572_v59 = vmul.f32 1.442695, %v543_v61 }
 0x1d6   :  { %v562_v8 = vmul.f32 1.442695, %v538_v3  ;;  %v570_v12 = vmul.f32 1.442695, %v542_v10  ;;  %v568_v17 = vmul.f32 1.442695, %v541_v44 }
 0x1d7   :  { %607 = vperm.xlu1 %1492, %v2106_v63   ;;  %1554 = vpow2.f32 %v566_v60  ;;  %v576_v21 = vmul.f32 1.442695, %v545_v36  ;;  %v574_v22 = vmul.f32 1.442695, %v544_v6 }
 0x1d8   :  { %616 = vperm.xlu0 %1491, %v2108_v2   ;;  %1556 = vpow2.f32 %v556_v0 }
 0x1d9   :  { %604 = vperm.xlu2 %1493, %v2111_v40   ;;  %1558 = vpow2.f32 %v564_v4 }
 0x1da   :  { %1560 = vpow2.f32 %v572_v59 }
 0x1db   :  { %1562 = vpow2.f32 %v562_v8 }
 0x1dc   :  { %1564 = vpow2.f32 %v570_v12 }
 0x1dd   :  { %v2120_v11 = vpop.eup %1554  ;;  %1566 = vpow2.f32 %v568_v17 }
 0x1de   :  { %v2123_v56 = vpop.eup %1556  ;;  %1568 = vpow2.f32 %v576_v21 }
 0x1df   :  { %613 = vperm.xlu1 %1492, %v2118_v7   ;;  %v2129_v15 = vpop.eup %1558  ;;  %1570 = vpow2.f32 %v574_v22 }
 0x1e0   :  { %625 = vperm.xlu0 %1491, %v2120_v11   ;;  %v2131_v19 = vpop.eup %1560 }
 0x1e1   :  { %610 = vperm.xlu2 %1493, %v2123_v56   ;;  %v2134_v20 = vpop.eup %1562 }
 0x1e2   :  { %v2140_v16 = vpop.eup %1564 }
 0x1e3   :  { %v2143_v23 = vpop.eup %1566 }
 0x1e4   :  { %v2146_v24 = vpop.eup %1568 }
 0x1e5   :  { %v2149_v32 = vpop.eup %1570 }
 0x1e7   :  { %622 = vperm.xlu1 %1492, %v2129_v15  }
 0x1e8   :  { %634 = vperm.xlu0 %1491, %v2131_v19  }
 0x1e9   :  { %619 = vperm.xlu2 %1493, %v2134_v20  }
 0x1ef   :  { %631 = vperm.xlu1 %1492, %v2140_v16  }
 0x1f1   :  { %628 = vperm.xlu2 %1493, %v2143_v23  }
 0x1f7   :  { %640 = vperm.xlu1 %1492, %v2146_v24  }
 0x1f9   :  { %637 = vperm.xlu2 %1493, %v2149_v32  }
 0x22b   :  { %v602_v13 = vpop.permute.xlu2 %601 }
 0x22c   :  { %v644_v35 = vperm.slane %v602_v13, %v2026_v43 }
 0x233   :  { %v605_v25 = vpop.permute.xlu2 %604 }
 0x234   :  { %v645_v47 = vperm.slane %v605_v25, %v2026_v43 }
 0x23b   :  { %v611_v29 = vpop.permute.xlu2 %610 }
 0x23c   :  { %v647_v41 = vperm.slane %v611_v29, %v2026_v43 }
 0x241   :  { %v599_v26 = vpop.permute.xlu1 %598 }
 0x242   :  { %v596_v34 = vpop.permute.xlu0 %595  ;;  %v643_v27 = vperm.slane %v599_v26, %v2026_v43 }
 0x243   :  { %v642_v28 = vperm.slane %v596_v34, %v2026_v43  ;;  %v620_v52 = vpop.permute.xlu2 %619 }
 0x244   :  { %v650_v1 = vperm.slane %v620_v52, %v2026_v43 }
 0x245   :  { %v658_v31 = vsel %vm466_vm2, %v643_v27, %v642_v28 }
 0x246   :  { %v659_v42 = vsel %vm468_vm3, %v644_v35, %v658_v31 }
 0x247   :  { %v660_v49 = vsel %vm470_vm4, %v645_v47, %v659_v42 }
 0x249   :  { %v608_v33 = vpop.permute.xlu1 %607 }
 0x24a   :  { %v646_v45 = vperm.slane %v608_v33, %v2026_v43  ;;  %v617_v46 = vpop.permute.xlu0 %616 }
 0x24b   :  { %v649_v48 = vperm.slane %v617_v46, %v2026_v43  ;;  %v629_v39 = vpop.permute.xlu2 %628 }
 0x24c   :  { %v661_v30 = vsel %vm2723_vm5, %v646_v45, %v660_v49  ;;  %v653_v59 = vperm.slane %v629_v39, %v2026_v43 }
 0x24d   :  { %v662_v54 = vsel %vm2722_vm6, %v647_v41, %v661_v30 }
 0x251   :  { %v614_v50 = vpop.permute.xlu1 %613 }
 0x252   :  { %v648_v38 = vperm.slane %v614_v50, %v2026_v43  ;;  %v626_v60 = vpop.permute.xlu0 %625 }
 0x253   :  { %v652_v3 = vperm.slane %v626_v60, %v2026_v43  ;;  %v638_v12 = vpop.permute.xlu2 %637 }
 0x254   :  { %v663_v55 = vsel %vm2721_vm7, %v648_v38, %v662_v54  ;;  %v656_v18 = vperm.slane %v638_v12, %v2026_v43 }
 0x255   :  { %v664_v57 = vsel %vm2720_vm8, %v649_v48, %v663_v55 }
 0x256   :  { %v674_v58 = vsel %vm489_vm9, %v664_v57, 0.0 }
 0x257   :  { %675 = vadd.xlane.f32.xlu0 %v674_v58 }
 0x259   :  { %v623_v62 = vpop.permute.xlu1 %622 }
 0x25a   :  { %v651_v0 = vperm.slane %v623_v62, %v2026_v43  ;;  %v635_v9 = vpop.permute.xlu0 %634 }
 0x25b   :  { %v655_v14 = vperm.slane %v635_v9, %v2026_v43 }
 0x25c   :  { %v665_v61 = vsel %vm466_vm2, %v651_v0, %v650_v1 }
 0x25d   :  { %v666_v4 = vsel %vm468_vm3, %v652_v3, %v665_v61 }
 0x25e   :  { %v667_v10 = vsel %vm470_vm4, %v653_v59, %v666_v4 }
 0x261   :  { %v632_v5 = vpop.permute.xlu1 %631 }
 0x262   :  { %v654_v8 = vperm.slane %v632_v5, %v2026_v43 }
 0x264   :  { %v668_v44 = vsel %vm2723_vm5, %v654_v8, %v667_v10 }
 0x265   :  { %v669_v17 = vsel %vm2722_vm6, %v655_v14, %v668_v44 }
 0x266   :  { %v670_v21 = vsel %vm2721_vm7, %v656_v18, %v669_v17 }
 0x269   :  { %v641_v36 = vpop.permute.xlu1 %640 }
 0x26a   :  { %v657_v6 = vperm.slane %v641_v36, %v2026_v43 }
 0x26c   :  { %v671_v22 = vsel %vm2720_vm8, %v657_v6, %v670_v21 }
 0x26d   :  { %v677_v13 = vsel %vm489_vm9, %v671_v22, 0.0 }
 0x26e   :  { %678 = vadd.xlane.f32.xlu2 %v677_v13 }
 0x2ca   :  { %v676_v25 = vpop.xlane.xlu0 %675 }
 0x2cb   :  { %v682_v26 = vperm.slane %v676_v25, 0  ;;  %v2184_v34 = vperm.slane %v676_v25, 1  ;;  %v2186_v27 = vperm.slane %v676_v25, 2  ;;  %v2188_v28 = vperm.slane %v676_v25, 3 }
 0x2cc   :  { %v2191_v29 = vperm.slane %v676_v25, 6  ;;  %v2194_v43 = vperm.slane %v676_v25, 7  ;;  %v2206_v30 = vperm.slane %v676_v25, 4  ;;  %v2208_v41 = vperm.slane %v676_v25, 5 }
 0x2cd   :  { %1572 = vrcp.f32 %v682_v26  ;;  %v723_v33 = vand.u32 2147483647, %v682_v26  ;;  %v725_v45 = vand.u32 2147483648, %v682_v26  ;;  %vm719_vm10 = vweird.f32 %v682_v26 }
 0x2ce   :  { %1574 = vrcp.f32 %v2184_v34  ;;  %v830_v49 = vand.u32 2147483648, %v2194_v43  ;;  %v828_v48 = vand.u32 2147483647, %v2194_v43  ;;  %vm809_vm13 = vweird.f32 %v2191_v29 }
 0x2cf   :  { %1576 = vrcp.f32 %v2186_v27  ;;  %vm2215_vm11 = vcmp.eq.f32.partialorder %v723_v33, 8.507059e+37  ;;  %v726_v58 = vor.u32 1.1754944e-38, %v725_v45  ;;  %vm824_vm14 = vweird.f32 %v2194_v43 }
 0x2d0   :  { %1578 = vrcp.f32 %v2188_v28  ;;  %v831_v62 = vor.u32 1.1754944e-38, %v830_v49  ;;  %v813_v0 = vand.u32 2147483647, %v2191_v29  ;;  %vm2228_vm15 = vcmp.eq.f32.partialorder %v828_v48, 8.507059e+37 }
 0x2d1   :  { %1580 = vrcp.f32 %v2191_v29  ;;  %v815_v9 = vand.u32 2147483648, %v2191_v29  ;;  %vm734_vm0 = vweird.f32 %v2184_v34  ;;  %v738_v10 = vand.u32 2147483647, %v2184_v34 }
 0x2d2   :  { %1582 = vrcp.f32 %v2194_v43  ;;  %v740_v36 = vand.u32 2147483648, %v2184_v34  ;;  %v753_v49 = vand.u32 2147483647, %v2186_v27 }
 0x2d3   :  { %v1573_v31 = vpop.eup %1572  ;;  %1584 = vrcp.f32 %v2206_v30  ;;  %vm739_vm5 = vcmp.eq.f32.partialorder %v738_v10, 8.507059e+37 }
 0x2d4   :  { %v2198_v35 = vpop.eup %1574  ;;  %v715_v42 = vmul.f32 %v1573_v31, %v682_v26  ;;  %vm720_vm12 = vweird.f32 %v1573_v31  ;;  %1586 = vrcp.f32 %v2208_v41  ;;  %v785_v26 = vand.u32 2147483648, %v2206_v30 }
 0x2d5   :  { %v2201_v47 = vpop.eup %1576  ;;  %v730_v46 = vmul.f32 %v2198_v35, %v2184_v34  ;;  %vm721_vm9 = vmor %vm719_vm10, %vm720_vm12  ;;  %vm735_vm8 = vweird.f32 %v2198_v35 }
 0x2d6   :  { %v716_v50 = vsub.f32 1.0, %v715_v42  ;;  %v745_v52 = vmul.f32 %v2201_v47, %v2186_v27  ;;  %v2212_v38 = vpop.eup %1578  ;;  %vm2250_vm7 = vmor %vm734_vm0, %vm735_vm8  ;;  %v816_v42 = vor.u32 1.1754944e-38, %v815_v9  ;;  %vm750_vm8 = vweird.f32 %v2201_v47 }
 0x2d7   :  { %v731_v55 = vsub.f32 1.0, %v730_v46  ;;  %v1581_v60 = vpop.eup %1580  ;;  %v760_v5 = vmul.f32 %v2212_v38, %v2188_v28 }
 0x2d8   :  { %v717_v57 = vmul.f32 %v1573_v31, %v716_v50  ;;  %v746_v39 = vsub.f32 1.0, %v745_v52  ;;  %v1583_v61 = vpop.eup %1582  ;;  %v805_v4 = vmul.f32 %v1581_v60, %v2191_v29  ;;  %vm810_vm10 = vweird.f32 %v1581_v60 }
 0x2d9   :  { %v732_v1 = vmul.f32 %v2198_v35, %v731_v55  ;;  %v820_v59 = vmul.f32 %v1583_v61, %v2194_v43  ;;  %v761_v13 = vsub.f32 1.0, %v760_v5  ;;  %vm825_vm12 = vweird.f32 %v1583_v61  ;;  %v2255_v33 = vpop.eup %1584  ;;  %vm811_vm0 = vmor %vm809_vm13, %vm810_vm10 }
 0x2da   :  { %v718_v3 = vadd.f32 %v1573_v31, %v717_v57  ;;  %v806_v12 = vsub.f32 1.0, %v805_v4  ;;  %v747_v6 = vmul.f32 %v2201_v47, %v746_v39  ;;  %v741_v50 = vor.u32 1.1754944e-38, %v740_v36  ;;  %vm826_vm6 = vmor %vm824_vm14, %vm825_vm12 }
 0x2db   :  { %v733_v14 = vadd.f32 %v2198_v35, %v732_v1  ;;  %v821_v17 = vsub.f32 1.0, %v820_v59  ;;  %v762_v54 = vmul.f32 %v2212_v38, %v761_v13  ;;  %vm764_vm13 = vweird.f32 %v2188_v28  ;;  %v2310_v59 = vpop.eup %1586 }
 0x2dc   :  { %v722_v44 = vsel %vm721_vm9, %v1573_v31, %v718_v3  ;;  %v807_v22 = vmul.f32 %v1581_v60, %v806_v12  ;;  %vm2244_vm9 = vcmp.eq.f32.partialorder %v813_v0, 8.507059e+37  ;;  %v748_v52 = vadd.f32 %v2201_v47, %v747_v6 }
 0x2dd   :  { %v727_v18 = vsel %vm2215_vm11, %v726_v58, %v722_v44  ;;  %v822_v25 = vmul.f32 %v1583_v61, %v821_v17  ;;  %vm749_vm11 = vweird.f32 %v2186_v27  ;;  %v737_v45 = vsel %vm2250_vm7, %v2198_v35, %v733_v14 }
 0x2de   :  { %v728_v21 = vmul.f32 %v2096_v51, %v727_v18  ;;  %v808_v51 = vadd.f32 %v1581_v60, %v807_v22  ;;  %v755_v35 = vand.u32 2147483648, %v2186_v27  ;;  %v742_v58 = vsel %vm739_vm5, %v741_v50, %v737_v45  ;;  %vm2283_vm7 = vmor %vm749_vm11, %vm750_vm8 }
 0x2df   :  { %v823_v46 = vadd.f32 %v1583_v61, %v822_v25  ;;  %vm754_vm5 = vcmp.eq.f32.partialorder %v753_v49, 8.507059e+37  ;;  %v775_v3 = vmul.f32 %v2255_v33, %v2206_v30  ;;  %vm779_vm10 = vweird.f32 %v2206_v30 }
 0x2e0   :  { %956 = vperm.xlu1 %1492, %v728_v21   ;;  %v812_v48 = vsel %vm811_vm0, %v1581_v60, %v808_v51  ;;  %v756_v27 = vor.u32 1.1754944e-38, %v755_v35  ;;  %vm780_vm12 = vweird.f32 %v2255_v33 }
 0x2e1   :  { %v2263_v34 = vpop.xlane.xlu2 %678  ;;  %v827_v55 = vsel %vm826_vm6, %v1583_v61, %v823_v46  ;;  %v817_v29 = vsel %vm2244_vm9, %v816_v42, %v812_v48  ;;  %v752_v61 = vsel %vm2283_vm7, %v2201_v47, %v748_v52  ;;  %vm765_vm6 = vweird.f32 %v2212_v38 }
 0x2e2   :  { %v2275_v57 = vperm.slane %v2263_v34, 2  ;;  %v832_v43 = vsel %vm2228_vm15, %v831_v62, %v827_v55  ;;  %v818_v60 = vmul.f32 %v2118_v7, %v817_v29  ;;  %v2289_v39 = vperm.slane %v2263_v34, 4  ;;  %vm2316_vm14 = vmor %vm764_vm13, %vm765_vm6 }
 0x2e3   :  { %v833_v1 = vmul.f32 %v2108_v2, %v832_v43  ;;  %v2295_v62 = vperm.slane %v2263_v34, 5  ;;  %v743_v7 = vmul.f32 %v2094_v37, %v742_v58  ;;  %v763_v2 = vadd.f32 %v2212_v38, %v762_v54 }
 0x2e4   :  { %986 = vperm.xlu2 %1493, %v818_v60   ;;  %1588 = vrcp.f32 %v2275_v57  ;;  %v768_v47 = vand.u32 2147483647, %v2188_v28  ;;  %v2305_v4 = vperm.slane %v2263_v34, 7  ;;  %v757_v5 = vsel %vm754_vm5, %v756_v27, %v752_v61 }
 0x2e5   :  { %991 = vperm.xlu0 %1491, %v833_v1   ;;  %v770_v37 = vand.u32 2147483648, %v2188_v28  ;;  %1590 = vrcp.f32 %v2289_v39  ;;  %v2313_v8 = vperm.slane %v2263_v34, 0  ;;  %v776_v10 = vsub.f32 1.0, %v775_v3 }
 0x2e6   :  { %1592 = vrcp.f32 %v2295_v62  ;;  %v2321_v44 = vperm.slane %v2263_v34, 1  ;;  %v758_v12 = vmul.f32 %v2099_v53, %v757_v5  ;;  %v767_v28 = vsel %vm2316_vm14, %v2212_v38, %v763_v2  ;;  %vm2371_vm14 = vmor %vm779_vm10, %vm780_vm12 }
 0x2e7   :  { %vm769_vm15 = vcmp.eq.f32.partialorder %v768_v47, 8.507059e+37  ;;  %1594 = vrcp.f32 %v2305_v4  ;;  %v903_v14 = vand.u32 2147483647, %v2289_v39  ;;  %v905_v17 = vand.u32 2147483648, %v2289_v39 }
 0x2e8   :  { %961 = vperm.xlu1 %1492, %v743_v7   ;;  %v771_v18 = vor.u32 1.1754944e-38, %v770_v37  ;;  %v873_v6 = vand.u32 2147483647, %v2275_v57  ;;  %v875_v21 = vand.u32 2147483648, %v2275_v57  ;;  %v783_v53 = vand.u32 2147483647, %v2206_v30 }
 0x2e9   :  { %1596 = vrcp.f32 %v2313_v8  ;;  %v777_v13 = vmul.f32 %v2255_v33, %v776_v10  ;;  %vm899_vm9 = vweird.f32 %v2289_v39  ;;  %vm869_vm11 = vweird.f32 %v2275_v57 }
 0x2ea   :  { %v1589_v36 = vpop.eup %1588  ;;  %v772_v22 = vsel %vm769_vm15, %v771_v18, %v767_v28  ;;  %1598 = vrcp.f32 %v2321_v44  ;;  %vm2345_vm0 = vcmp.eq.f32.partialorder %v903_v14, 8.507059e+37  ;;  %v906_v45 = vor.u32 1.1754944e-38, %v905_v17 }
 0x2eb   :  { %v865_v38 = vmul.f32 %v1589_v36, %v2275_v57  ;;  %v1591_v25 = vpop.eup %1590  ;;  %v790_v46 = vmul.f32 %v2310_v59, %v2208_v41  ;;  %vm2351_vm8 = vcmp.eq.f32.partialorder %v873_v6, 8.507059e+37  ;;  %v876_v52 = vor.u32 1.1754944e-38, %v875_v21 }
 0x2ec   :  { %v2342_v31 = vpop.eup %1592  ;;  %v895_v51 = vmul.f32 %v1591_v25, %v2289_v39  ;;  %v773_v48 = vmul.f32 %v2111_v40, %v772_v22  ;;  %vm870_vm7 = vweird.f32 %v1589_v36  ;;  %v778_v58 = vadd.f32 %v2255_v33, %v777_v13 }
 0x2ed   :  { %v866_v49 = vsub.f32 1.0, %v865_v38  ;;  %v910_v35 = vmul.f32 %v2342_v31, %v2295_v62  ;;  %v2358_v54 = vpop.eup %1594  ;;  %vm944_vm5 = vweird.f32 %v2305_v4  ;;  %vm914_vm6 = vweird.f32 %v2295_v62  ;;  %vm871_vm15 = vmor %vm869_vm11, %vm870_vm7 }
 0x2ee   :  { %v896_v55 = vsub.f32 1.0, %v895_v51  ;;  %v940_v43 = vmul.f32 %v2358_v54, %v2305_v4  ;;  %vm900_vm13 = vweird.f32 %v1591_v25  ;;  %v791_v7 = vsub.f32 1.0, %v790_v46 }
 0x2ef   :  { %v867_v29 = vmul.f32 %v1589_v36, %v866_v49  ;;  %v911_v60 = vsub.f32 1.0, %v910_v35  ;;  %v2365_v0 = vpop.eup %1596  ;;  %v918_v47 = vand.u32 2147483647, %v2295_v62  ;;  %v920_v5 = vand.u32 2147483648, %v2295_v62  ;;  %vm901_vm12 = vmor %vm899_vm9, %vm900_vm13  ;;  %v2479_v62 = vld [vmem:[#allocation2 + $0x8] sm:$0xff] }
 0x2f0   :  { %966 = vperm.xlu1 %1492, %v758_v12   ;;  %v897_v40 = vmul.f32 %v1591_v25, %v896_v55  ;;  %v2375_v27 = vpop.eup %1598  ;;  %v941_v3 = vsub.f32 1.0, %v940_v43  ;;  %vm915_vm10 = vweird.f32 %v2342_v31  ;;  %v782_v10 = vsel %vm2371_vm14, %v2255_v33, %v778_v58 }
 0x2f1   :  { %v868_v1 = vadd.f32 %v1589_v36, %v867_v29  ;;  %v912_v2 = vmul.f32 %v2342_v31, %v911_v60  ;;  %vm945_vm11 = vweird.f32 %v2358_v54  ;;  %v792_v18 = vmul.f32 %v2310_v59, %v791_v7  ;;  %vm2405_vm9 = vmor %vm914_vm6, %vm915_vm10 }
 0x2f2   :  { %v898_v37 = vadd.f32 %v1591_v25, %v897_v40  ;;  %v942_v12 = vmul.f32 %v2358_v54, %v941_v3  ;;  %v835_v33 = vmul.f32 %v2365_v0, %v2313_v8  ;;  %v950_v6 = vand.u32 2147483648, %v2305_v4 }
 0x2f3   :  { %v872_v9 = vsel %vm871_vm15, %v1589_v36, %v868_v1  ;;  %v913_v28 = vadd.f32 %v2342_v31, %v912_v2  ;;  %v948_v22 = vand.u32 2147483647, %v2305_v4  ;;  %vm919_vm7 = vcmp.eq.f32.partialorder %v918_v47, 8.507059e+37 }
 0x2f4   :  { %v877_v57 = vsel %vm2351_vm8, %v876_v52, %v872_v9  ;;  %v902_v14 = vsel %vm901_vm12, %v1591_v25, %v898_v37  ;;  %v943_v36 = vadd.f32 %v2358_v54, %v942_v12  ;;  %v2417_v25 = vperm.slane %v2263_v34, 3  ;;  %vm2423_vm8 = vmor %vm944_vm5, %vm945_vm11 }
 0x2f5   :  { %v878_v17 = vmul.f32 %v2120_v11, %v877_v57  ;;  %v907_v39 = vsel %vm2345_vm0, %v906_v45, %v902_v14  ;;  %v786_v11 = vor.u32 1.1754944e-38, %v785_v26  ;;  %v917_v13 = vsel %vm2405_vm9, %v2342_v31, %v913_v28  ;;  %v1620_v57 = vld [vmem:[#allocation5 + $0x8] sm:$0xff] }
 0x2f6   :  { %v908_v38 = vmul.f32 %v2140_v16, %v907_v39  ;;  %vm784_vm0 = vcmp.eq.f32.partialorder %v783_v53, 8.507059e+37  ;;  %v921_v16 = vor.u32 1.1754944e-38, %v920_v5  ;;  %v947_v30 = vsel %vm2423_vm8, %v2358_v54, %v943_v36 }
 0x2f7   :  { %1006 = vperm.xlu0 %1491, %v878_v17   ;;  %v787_v26 = vsel %vm784_vm0, %v786_v11, %v782_v10  ;;  %v793_v53 = vadd.f32 %v2310_v59, %v792_v18  ;;  %vm795_vm6 = vweird.f32 %v2310_v59  ;;  %v836_v31 = vsub.f32 1.0, %v835_v33 }
 0x2f8   :  { %971 = vperm.xlu1 %1492, %v773_v48   ;;  %1016 = vperm.xlu2 %1493, %v908_v38   ;;  %v951_v51 = vor.u32 1.1754944e-38, %v950_v6  ;;  %v922_v42 = vsel %vm919_vm7, %v921_v16, %v917_v13  ;;  %v800_v4 = vand.u32 2147483648, %v2208_v41  ;;  %vm949_vm5 = vcmp.eq.f32.partialorder %v948_v22, 8.507059e+37 }
 0x2f9   :  { %v788_v45 = vmul.f32 %v2106_v63, %v787_v26  ;;  %vm794_vm13 = vweird.f32 %v2208_v41  ;;  %v798_v49 = vand.u32 2147483647, %v2208_v41  ;;  %1600 = vrcp.f32 %v2417_v25 }
 0x2fa   :  { %v952_v46 = vsel %vm949_vm5, %v951_v51, %v947_v30  ;;  %vm796_vm14 = vmor %vm794_vm13, %vm795_vm6  ;;  %v923_v50 = vmul.f32 %v2131_v19, %v922_v42  ;;  %v837_v48 = vmul.f32 %v2365_v0, %v836_v31  ;;  %v850_v35 = vmul.f32 %v2375_v27, %v2321_v44  ;;  %v1226_v51 = vld [vmem:[%s2714_s7 + $0x68] sm:$0xff]  ;;  %v1225_v42 = vld [vmem:[%s2714_s7 + $0x60] sm:$0xff] }
 0x2fb   :  { %v797_v52 = vsel %vm796_vm14, %v2310_v59, %v793_v53  ;;  %v801_v54 = vor.u32 1.1754944e-38, %v800_v4  ;;  %v953_v63 = vmul.f32 %v2146_v24, %v952_v46  ;;  %vm799_vm15 = vcmp.eq.f32.partialorder %v798_v49, 8.507059e+37  ;;  %v1228_v53 = vld [vmem:[%s2714_s7 + $0x78] sm:$0xff] }
 0x2fc   :  { %v2444_v41 = vperm.slane %v2263_v34, 6  ;;  %v838_v19 = vadd.f32 %v2365_v0, %v837_v48  ;;  %vm840_vm10 = vweird.f32 %v2365_v0  ;;  %v851_v59 = vsub.f32 1.0, %v850_v35  ;;  %v2453_v34 = vld [vmem:[#allocation2] sm:$0xff]  ;;  %1233 = vmatpush.msrb.mxu2 %v1228_v53  ;;  %v1624_v48 = vld [vmem:[%s2708_s1 + $0x10] sm:$0xff] }
 0x2fd   :  { %v802_v55 = vsel %vm799_vm15, %v801_v54, %v797_v52  ;;  %v845_v58 = vand.u32 2147483648, %v2313_v8  ;;  %vm839_vm12 = vweird.f32 %v2313_v8  ;;  %v843_v24 = vand.u32 2147483647, %v2313_v8  ;;  %v1625_v54 = vld [vmem:[%s2708_s1 + $0x18] sm:$0xff] }
 0x2fe   :  { %v803_v43 = vmul.f32 %v2123_v56, %v802_v55  ;;  %1602 = vrcp.f32 %v2444_v41  ;;  %vm841_vm11 = vmor %vm839_vm12, %vm840_vm10  ;;  %v852_v40 = vmul.f32 %v2375_v27, %v851_v59  ;;  %vm855_vm0 = vweird.f32 %v2375_v27 }
 0x2ff   :  { %1021 = vperm.xlu0 %1491, %v923_v50   ;;  %v1601_v29 = vpop.eup %1600  ;;  %v842_v60 = vsel %vm841_vm11, %v2365_v0, %v838_v19  ;;  %v846_v61 = vor.u32 1.1754944e-38, %v845_v58  ;;  %vm844_vm9 = vcmp.eq.f32.partialorder %v843_v24, 8.507059e+37  ;;  %v860_v2 = vand.u32 2147483648, %v2321_v44  ;;  %v1623_v50 = vld [vmem:[%s2708_s1] sm:$0xff]  ;;  %v1223_v58 = vld [vmem:[%s2714_s7 + $0x50] sm:$0xff] }
 0x300   :  { %976 = vperm.xlu1 %1492, %v788_v45   ;;  %1031 = vperm.xlu2 %1493, %v953_v63   ;;  %v880_v1 = vmul.f32 %v1601_v29, %v2417_v25  ;;  %v853_v8 = vadd.f32 %v2375_v27, %v852_v40  ;;  %vm854_vm8 = vweird.f32 %v2321_v44  ;;  %v858_v47 = vand.u32 2147483647, %v2321_v44  ;;  %v1622_v45 = vld [vmem:[%s2708_s1 + $0x8] sm:$0xff] }
 0x301   :  { %v847_v56 = vsel %vm844_vm9, %v846_v61, %v842_v60  ;;  %vm856_vm7 = vmor %vm854_vm8, %vm855_vm0  ;;  %v861_v10 = vor.u32 1.1754944e-38, %v860_v2  ;;  %vm885_vm5 = vweird.f32 %v1601_v29  ;;  %v890_v14 = vand.u32 2147483648, %v2417_v25  ;;  %v1627_v60 = vld [vmem:[%s2708_s1 + $0x28] sm:$0xff] }
 0x302   :  { %v881_v7 = vsub.f32 1.0, %v880_v1  ;;  %v848_v0 = vmul.f32 %v2134_v20, %v847_v56  ;;  %v857_v5 = vsel %vm856_vm7, %v2375_v27, %v853_v8  ;;  %vm859_vm6 = vcmp.eq.f32.partialorder %v858_v47, 8.507059e+37  ;;  %v1222_v61 = vld [vmem:[%s2714_s7 + $0x48] sm:$0xff]  ;;  %v1628_v56 = vld [vmem:[%s2708_s1 + $0x30] sm:$0xff] }
 0x303   :  { %v862_v12 = vsel %vm859_vm6, %v861_v10, %v857_v5  ;;  %vm884_vm13 = vweird.f32 %v2417_v25  ;;  %v888_v27 = vand.u32 2147483647, %v2417_v25  ;;  %v891_v33 = vor.u32 1.1754944e-38, %v890_v14  ;;  %v1621_v25 = vld [vmem:[#allocation5] sm:$0xff] }
 0x304   :  { %v1603_v3 = vpop.eup %1602  ;;  %v882_v37 = vmul.f32 %v1601_v29, %v881_v7  ;;  %v863_v44 = vmul.f32 %v2129_v15, %v862_v12  ;;  %vm886_vm14 = vmor %vm884_vm13, %vm885_vm5  ;;  %v935_v6 = vand.u32 2147483648, %v2444_v41  ;;  %vm929_vm12 = vweird.f32 %v2444_v41 }
 0x305   :  { %v925_v9 = vmul.f32 %v1603_v3, %v2444_v41  ;;  %vm889_vm15 = vcmp.eq.f32.partialorder %v888_v27, 8.507059e+37  ;;  %vm930_vm10 = vweird.f32 %v1603_v3  ;;  %v933_v15 = vand.u32 2147483647, %v2444_v41  ;;  %v1626_v41 = vld [vmem:[%s2708_s1 + $0x20] sm:$0xff] }
 0x306   :  { %v883_v28 = vadd.f32 %v1601_v29, %v882_v37  ;;  %vm931_vm11 = vmor %vm929_vm12, %vm930_vm10  ;;  %v936_v38 = vor.u32 1.1754944e-38, %v935_v6  ;;  %v1221_v37 = vld [vmem:[%s2714_s7 + $0x40] sm:$0xff]  ;;  %vm2746_vm0 = vcmask 1044484   ;;  %vm2747_vm8 = vcmask 1045509  }
 0x307   :  { %1196 = vrot.lane.b32.xlu0 %v2453_v34, %s1746_s5  ;;  %v926_v20 = vsub.f32 1.0, %v925_v9  ;;  %vm934_vm9 = vcmp.eq.f32.partialorder %v933_v15, 8.507059e+37  ;;  %v1630_v6 = vld [vmem:[%s2708_s1 + $0x40] sm:$0xff]  ;;  %vm2748_vm7 = vcmask 1046534   ;;  %vm2749_vm6 = vcmask 1047559   ;;  %vm2751_vm13 = vmmov %vm2747_vm8 }
 0x308   :  { %981 = vperm.xlu1 %1492, %v803_v43   ;;  %v887_v17 = vsel %vm886_vm14, %v1601_v29, %v883_v28  ;;  %1198 = vrot.lane.b32.xlu2 %v2479_v62, %s1746_s5  ;;  %v1224_v29 = vld [vmem:[%s2714_s7 + $0x58] sm:$0xff]  ;;  %vm1210_vm5 = vcmask 785408   ;;  %vm2753_vm14 = vmmov %vm2749_vm6 }
 0x309   :  { %v927_v18 = vmul.f32 %v1603_v3, %v926_v20  ;;  %v892_v39 = vsel %vm889_vm15, %v891_v33, %v887_v17  ;;  %v1220_v33 = vld [vmem:[%s2714_s7 + $0x38] sm:$0xff] }
 0x30a   :  { %v893_v21 = vmul.f32 %v2143_v23, %v892_v39  ;;  %v1219_v39 = vld [vmem:[%s2714_s7 + $0x30] sm:$0xff] }
 0x30b   :  { %v928_v36 = vadd.f32 %v1603_v3, %v927_v18 }
 0x30d   :  { %v932_v11 = vsel %vm931_vm11, %v1603_v3, %v928_v36 }
 0x30e   :  { %v937_v22 = vsel %vm934_vm9, %v936_v38, %v932_v11 }
 0x30f   :  { %1204 = vrot.lane.b32.xlu0 %v1620_v57, %s1747_s6  ;;  %v938_v13 = vmul.f32 %v2149_v32, %v937_v22  ;;  %v1227_v32 = vld [vmem:[%s2714_s7 + $0x70] sm:$0xff]  ;;  %v1629_v57 = vld [vmem:[%s2708_s1 + $0x38] sm:$0xff]  ;;  %v1218_v22 = vld [vmem:[%s2714_s7 + $0x28] sm:$0xff] }
 0x310   :  { %996 = vperm.xlu1 %1492, %v848_v0   ;;  %1234 = vmatpush.msrb.mxu2 %v1227_v32 }
 0x312   :  { %1235 = vmatpush.msrb.mxu2 %v1226_v51  ;;  %v1217_v51 = vld [vmem:[%s2714_s7 + $0x20] sm:$0xff] }
 0x314   :  { %1236 = vmatpush.msrb.mxu2 %v1225_v42 }
 0x316   :  { %1237 = vmatpush.msrb.mxu2 %v1224_v29  ;;  %v1215_v29 = vld [vmem:[%s2714_s7 + $0x10] sm:$0xff] }
 0x318   :  { %1001 = vperm.xlu1 %1492, %v863_v44   ;;  %1238 = vmatpush.msrb.mxu2 %v1223_v58 }
 0x31a   :  { %1239 = vmatpush.msrb.mxu2 %v1222_v61 }
 0x31c   :  { %1240 = vmatpush.msrb.mxu2 %v1221_v37 }
 0x31e   :  { %1241 = vmatpush.msrb.mxu2 %v1220_v33 }
 0x320   :  { %1011 = vperm.xlu1 %1492, %v893_v21   ;;  %1242 = vmatpush.msrb.mxu2 %v1219_v39 }
 0x322   :  { %1243 = vmatpush.msrb.mxu2 %v1218_v22 }
 0x324   :  { %1244 = vmatpush.msrb.mxu2 %v1217_v51 }
 0x328   :  { %1026 = vperm.xlu1 %1492, %v938_v13  }
 0x330   :  { %1202 = vrot.lane.b32.xlu1 %v1621_v25, %s1747_s6  ;;  %v1631_v25 = vld [vmem:[%s2708_s1 + $0x50] sm:$0xff] }
 0x33e   :  { %v987_v4 = vpop.permute.xlu2 %986 }
 0x33f   :  { %v1040_v8 = vmul.f32 %v1628_v56, %v987_v4 }
 0x341   :  { %v1092_v20 = vsel %vm150_vm1, %v1040_v8, 0.0  ;;  %v1635_v8 = vld [vmem:[%s2708_s1 + $0x68] sm:$0xff] }
 0x342   :  { %v1093_v15 = vrot.slane %v1092_v20, 4 }
 0x352   :  { %v957_v23 = vpop.permute.xlu1 %956  ;;  %v1017_v2 = vpop.permute.xlu2 %1016 }
 0x353   :  { %v1034_v52 = vmul.f32 %v1623_v50, %v957_v23  ;;  %v1216_v50 = vld [vmem:[%s2714_s7 + $0x18] sm:$0xff] }
 0x354   :  { %1245 = vmatpush.msrb.mxu2 %v1216_v50 }
 0x355   :  { %v1050_v43 = vsel %vm150_vm1, %v1034_v52, 0.0 }
 0x356   :  { %v1051_v0 = vrot.slane %v1050_v43, 4  ;;  %1246 = vmatpush.msrb.mxu2 %v1215_v29 }
 0x357   :  { %v992_v46 = vpop.permute.xlu0 %991 }
 0x358   :  { %v1041_v12 = vmul.f32 %v1629_v57, %v992_v46  ;;  %v1052_v27 = vadd.f32 %v1051_v0, %v1050_v43  ;;  %v1633_v43 = vld [vmem:[%s2708_s1 + $0x78] sm:$0xff] }
 0x35a   :  { %v962_v16 = vpop.permute.xlu1 %961  ;;  %v1099_v11 = vsel %vm150_vm1, %v1041_v12, 0.0  ;;  %v1053_v53 = vrot.slane %v1052_v27, 2 }
 0x35b   :  { %v1035_v49 = vmul.f32 %v1622_v45, %v962_v16  ;;  %v1100_v42 = vrot.slane %v1099_v11, 4  ;;  %v1094_v45 = vadd.f32 %v1093_v15, %v1092_v20  ;;  %v106_v20 = vld [vmem:[#allocation7] sm:$0xff] }
 0x35c   :  { %1298 = vrot.lane.b32.xlu0 %v106_v20, %s1748_s29 }
 0x35d   :  { %v1057_v19 = vsel %vm150_vm1, %v1035_v49, 0.0  ;;  %v1032_v49 = vpop.permute.xlu2 %1031  ;;  %v1101_v58 = vadd.f32 %v1100_v42, %v1099_v11  ;;  %v1095_v61 = vrot.slane %v1094_v45, 2 }
 0x35e   :  { %v1058_v7 = vrot.slane %v1057_v19, 4 }
 0x360   :  { %v1059_v14 = vadd.f32 %v1058_v7, %v1057_v19 }
 0x362   :  { %v967_v26 = vpop.permute.xlu1 %966  ;;  %v1060_v13 = vrot.slane %v1059_v14, 2 }
 0x363   :  { %v1036_v35 = vmul.f32 %v1624_v48, %v967_v26  ;;  %v1632_v26 = vld [vmem:[%s2708_s1 + $0x60] sm:$0xff] }
 0x364   :  { %v1061_v52 = vadd.f32 %v1060_v13, %v1059_v14  ;;  %v1102_v14 = vrot.slane %v1101_v58, 2 }
 0x365   :  { %v1064_v24 = vsel %vm150_vm1, %v1036_v35, 0.0 }
 0x366   :  { %v1065_v47 = vrot.slane %v1064_v24, 4  ;;  %v1062_v0 = vrot.slane %v1061_v52, 1 }
 0x368   :  { %v1066_v17 = vadd.f32 %v1065_v47, %v1064_v24  ;;  %v1049_v24 = vmul.f32 %v1633_v43, %v1032_v49 }
 0x369   :  { %v1007_v9 = vpop.permute.xlu0 %1006 }
 0x36a   :  { %v972_v30 = vpop.permute.xlu1 %971  ;;  %v1044_v23 = vmul.f32 %v1631_v25, %v1007_v9  ;;  %v1067_v32 = vrot.slane %v1066_v17, 2 }
 0x36b   :  { %v1037_v63 = vmul.f32 %v1625_v54, %v972_v30  ;;  %v1046_v30 = vmul.f32 %v1632_v26, %v1017_v2  ;;  %v1214_v2 = vld [vmem:[%s2714_s7 + $0x8] sm:$0xff] }
 0x36c   :  { %v1120_v48 = vsel %vm150_vm1, %v1044_v23, 0.0  ;;  %v1068_v19 = vadd.f32 %v1067_v32, %v1066_v17  ;;  %1247 = vmatpush.msrb.mxu2 %v1214_v2  ;;  %v1103_v32 = vadd.f32 %v1102_v14, %v1101_v58 }
 0x36d   :  { %v1071_v1 = vsel %vm150_vm1, %v1037_v63, 0.0  ;;  %v1121_v56 = vrot.slane %v1120_v48, 4 }
 0x36e   :  { %v1072_v10 = vrot.slane %v1071_v1, 4  ;;  %v1069_v57 = vrot.slane %v1068_v19, 1  ;;  %v1104_v29 = vrot.slane %v1103_v32, 1 }
 0x36f   :  { %v1122_v17 = vadd.f32 %v1121_v56, %v1120_v48 }
 0x370   :  { %v1073_v36 = vadd.f32 %v1072_v10, %v1071_v1  ;;  %v1070_v22 = vadd.f32 %v1069_v57, %v1068_v19 }
 0x371   :  { %v1022_v35 = vpop.permute.xlu0 %1021 }
 0x372   :  { %v977_v31 = vpop.permute.xlu1 %976  ;;  %v1074_v4 = vrot.slane %v1073_v36, 2  ;;  %v1047_v7 = vmul.f32 %v1635_v8, %v1022_v35 }
 0x373   :  { %v1038_v55 = vmul.f32 %v1626_v41, %v977_v31  ;;  %v1134_v41 = vsel %vm150_vm1, %v1046_v30, 0.0  ;;  %v1636_v30 = vld [vmem:[%s2708_s1 + $0x58] sm:$0xff] }
 0x374   :  { %v1135_v9 = vrot.slane %v1134_v41, 4 }
 0x375   :  { %v1078_v3 = vsel %vm150_vm1, %v1038_v55, 0.0  ;;  %v1054_v55 = vadd.f32 %v1053_v53, %v1052_v27 }
 0x376   :  { %v1079_v28 = vrot.slane %v1078_v3, 4  ;;  %v1136_v11 = vadd.f32 %v1135_v9, %v1134_v41 }
 0x377   :  { %v1055_v10 = vrot.slane %v1054_v55, 1 }
 0x378   :  { %v1080_v38 = vadd.f32 %v1079_v28, %v1078_v3  ;;  %v1213_v28 = vld [vmem:[%s2714_s7] sm:$0xff]  ;;  %v1137_v35 = vrot.slane %v1136_v11, 2 }
 0x379   :  { %1248 = vmatpush.msrb.mxu2 %v1213_v28 }
 0x37a   :  { %v982_v59 = vpop.permute.xlu1 %981  ;;  %v1081_v46 = vrot.slane %v1080_v38, 2 }
 0x37b   :  { %v1039_v40 = vmul.f32 %v1627_v60, %v982_v59  ;;  %v1075_v60 = vadd.f32 %v1074_v4, %v1073_v36  ;;  %v1096_v36 = vadd.f32 %v1095_v61, %v1094_v45  ;;  %v1138_v61 = vadd.f32 %v1137_v35, %v1136_v11 }
 0x37c   :  { %v1082_v3 = vadd.f32 %v1081_v46, %v1080_v38  ;;  %v1056_v38 = vadd.f32 %v1055_v10, %v1054_v55 }
 0x37d   :  { %v1085_v5 = vsel %vm150_vm1, %v1039_v40, 0.0  ;;  %v1634_v40 = vld [vmem:[%s2708_s1 + $0x48] sm:$0xff]  ;;  %v1076_v27 = vrot.slane %v1075_v60, 1  ;;  %v1097_v50 = vrot.slane %v1096_v36, 1  ;;  %v1139_v28 = vrot.slane %v1138_v61, 1 }
 0x37e   :  { %v1086_v44 = vrot.slane %v1085_v5, 4  ;;  %v1083_v33 = vrot.slane %v1082_v3, 1 }
 0x380   :  { %v1087_v16 = vadd.f32 %v1086_v44, %v1085_v5  ;;  %v1155_v44 = vsel %vm150_vm1, %v1049_v24, 0.0  ;;  %v1084_v51 = vadd.f32 %v1083_v33, %v1082_v3 }
 0x381   :  { %v1156_v23 = vrot.slane %v1155_v44, 4 }
 0x382   :  { %v997_v18 = vpop.permute.xlu1 %996  ;;  %v1088_v54 = vrot.slane %v1087_v16, 2 }
 0x383   :  { %v1042_v21 = vmul.f32 %v1630_v6, %v997_v18  ;;  %v1141_v18 = vsel %vm150_vm1, %v1047_v7, 0.0  ;;  %v1063_v6 = vadd.f32 %v1062_v0, %v1061_v52  ;;  %v1157_v58 = vadd.f32 %v1156_v23, %v1155_v44  ;;  %v1637_v7 = vld [vmem:[%s2708_s1 + $0x70] sm:$0xff] }
 0x384   :  { %v1089_v47 = vadd.f32 %v1088_v54, %v1087_v16  ;;  %v1077_v16 = vadd.f32 %v1076_v27, %v1075_v60  ;;  %v1142_v26 = vrot.slane %v1141_v18, 4  ;;  %v1098_v60 = vadd.f32 %v1097_v50, %v1096_v36  ;;  %v1197_v27 = vpop.permute.xlu0 %1196  ;;  %v1506_v50 = vld [vmem:[%s2715_s8] ss:$0 sm:$0xff] }
 0x385   :  { %v1106_v31 = vsel %vm150_vm1, %v1042_v21, 0.0  ;;  %v1178_v4 = vsel %vm466_vm2, %v1063_v6, %v1056_v38 }
 0x386   :  { %v1107_v63 = vrot.slane %v1106_v31, 4  ;;  %v1090_v21 = vrot.slane %v1089_v47, 1  ;;  %v1179_v52 = vsel %vm468_vm3, %v1070_v22, %v1178_v4 }
 0x387   :  { %v1180_v54 = vsel %vm470_vm4, %v1077_v16, %v1179_v52 }
 0x388   :  { %v1108_v5 = vadd.f32 %v1107_v63, %v1106_v31  ;;  %v1123_v31 = vrot.slane %v1122_v17, 2  ;;  %v1091_v45 = vadd.f32 %v1090_v21, %v1089_v47  ;;  %v1143_v63 = vadd.f32 %v1142_v26, %v1141_v18 }
 0x389   :  { %v1181_v19 = vsel %vm2746_vm0, %v1084_v51, %v1180_v54  ;;  %v1199_v51 = vpop.permute.xlu2 %1198 }
 0x38a   :  { %v1002_v59 = vpop.permute.xlu1 %1001  ;;  %v1109_v15 = vrot.slane %v1108_v5, 2  ;;  %v1124_v55 = vadd.f32 %v1123_v31, %v1122_v17  ;;  %v1182_v24 = vsel %vm2747_vm8, %v1091_v45, %v1181_v19  ;;  %v1144_v56 = vrot.slane %v1143_v63, 2 }
 0x38b   :  { %v1043_v1 = vmul.f32 %v1634_v40, %v1002_v59  ;;  %v1183_v0 = vsel %vm2748_vm7, %v1098_v60, %v1182_v24 }
 0x38c   :  { %v1110_v49 = vadd.f32 %v1109_v15, %v1108_v5  ;;  %v1125_v2 = vrot.slane %v1124_v55, 1  ;;  %v1105_v5 = vadd.f32 %v1104_v29, %v1103_v32  ;;  %v1145_v20 = vadd.f32 %v1144_v56, %v1143_v63  ;;  %v1205_v4 = vpop.permute.xlu0 %1204 }
 0x38d   :  { %v1113_v37 = vsel %vm150_vm1, %v1043_v1, 0.0 }
 0x38e   :  { %v1114_v12 = vrot.slane %v1113_v37, 4  ;;  %v1111_v43 = vrot.slane %v1110_v49, 1  ;;  %v2604_v44 = vsel %vm2749_vm6, %v1105_v5, %v1183_v0  ;;  %v1126_v17 = vadd.f32 %v1125_v2, %v1124_v55  ;;  %v107_v55 = vld [vmem:[#allocation7 + $0x8] sm:$0xff] }
 0x38f   :  { %v1208_v36 = vsel %vm150_vm1, %v2604_v44, %v1197_v27  ;;  %v1146_v11 = vrot.slane %v1145_v20, 1 }
 0x390   :  { %v1115_v39 = vadd.f32 %v1114_v12, %v1113_v37  ;;  %v1158_v37 = vrot.slane %v1157_v58, 2  ;;  %v1112_v9 = vadd.f32 %v1111_v43, %v1110_v49 }
 0x392   :  { %v1116_v13 = vrot.slane %v1115_v39, 2  ;;  %v1012_v25 = vpop.permute.xlu1 %1011 }
 0x393   :  { %v1045_v53 = vmul.f32 %v1636_v30, %v1012_v25  ;;  %v1147_v30 = vadd.f32 %v1146_v11, %v1145_v20 }
 0x394   :  { %v1117_v42 = vadd.f32 %v1116_v13, %v1115_v39  ;;  %v1159_v39 = vadd.f32 %v1158_v37, %v1157_v58  ;;  %v1140_v13 = vadd.f32 %v1139_v28, %v1138_v61 }
 0x395   :  { %v1127_v46 = vsel %vm150_vm1, %v1045_v53, 0.0 }
 0x396   :  { %v1128_v48 = vrot.slane %v1127_v46, 4  ;;  %v1118_v41 = vrot.slane %v1117_v42, 1  ;;  %v1160_v23 = vrot.slane %v1159_v39, 1 }
 0x398   :  { %v1129_v59 = vadd.f32 %v1128_v48, %v1127_v46  ;;  %v1119_v8 = vadd.f32 %v1118_v41, %v1117_v42  ;;  %v1161_v32 = vadd.f32 %v1160_v23, %v1159_v39 }
 0x39a   :  { %v1130_v40 = vrot.slane %v1129_v59, 2  ;;  %v1027_v1 = vpop.permute.xlu1 %1026  ;;  %v1185_v14 = vsel %vm466_vm2, %v1119_v8, %v1112_v9  ;;  %vm2750_vm2 = vmmov %vm2746_vm0 }
 0x39b   :  { %v1048_v3 = vmul.f32 %v1637_v7, %v1027_v1  ;;  %v1186_v6 = vsel %vm468_vm3, %v1126_v17, %v1185_v14  ;;  %vm2752_vm3 = vmmov %vm2748_vm7  ;;  %vm2754_vm7 = vcmask 261120  }
 0x39c   :  { %v1131_v47 = vadd.f32 %v1130_v40, %v1129_v59  ;;  %vm2755_vm6 = vmmov %vm2754_vm7 }
 0x39d   :  { %v1148_v10 = vsel %vm150_vm1, %v1048_v3, 0.0 }
 0x39e   :  { %v1132_v57 = vrot.slane %v1131_v47, 1  ;;  %v1149_v12 = vrot.slane %v1148_v10, 4 }
 0x3a0   :  { %v1133_v18 = vadd.f32 %v1132_v57, %v1131_v47  ;;  %v1150_v33 = vadd.f32 %v1149_v12, %v1148_v10 }
 0x3a2   :  { %v1151_v21 = vrot.slane %v1150_v33, 2  ;;  %v1203_v15 = vpop.permute.xlu1 %1202  ;;  %v1187_v38 = vsel %vm470_vm4, %v1133_v18, %v1186_v6 }
 0x3a3   :  { %v1211_v22 = vsel %vm1210_vm5, %v1208_v36, %v1203_v15  ;;  %v1188_v26 = vsel %vm2750_vm2, %v1140_v13, %v1187_v38 }
 0x3a4   :  { %v1152_v25 = vadd.f32 %v1151_v21, %v1150_v33  ;;  %1249 = vmatmul.f32.vlgmr.msrb.gmra.mxu2 %v1211_v22  ;;  %v1189_v31 = vsel %vm2751_vm13, %v1147_v30, %v1188_v26 }
 0x3a6   :  { %v1153_v16 = vrot.slane %v1152_v25, 1 }
 0x3a8   :  { %v1154_v53 = vadd.f32 %v1153_v16, %v1152_v25 }
 0x3aa   :  { %v1190_v42 = vsel %vm2752_vm3, %v1154_v53, %v1189_v31  ;;  %v1376_v31 = vld [vmem:[%s2716_s9 + $0x70] sm:$0xff] }
 0x3ab   :  { %v2615_v45 = vsel %vm2753_vm14, %v1161_v32, %v1190_v42  ;;  %v1372_v42 = vld [vmem:[%s2716_s9 + $0x50] sm:$0xff] }
 0x3ac   :  { %v1209_v49 = vsel %vm150_vm1, %v2615_v45, %v1199_v51  ;;  %v1373_v51 = vld [vmem:[%s2716_s9 + $0x58] sm:$0xff] }
 0x3ad   :  { %v1212_v46 = vsel %vm1210_vm5, %v1209_v49, %v1205_v4  ;;  %v1371_v4 = vld [vmem:[%s2716_s9 + $0x48] sm:$0xff]  ;;  %v1369_v49 = vld [vmem:[%s2716_s9 + $0x38] sm:$0xff] }
 0x3ae   :  { %1252 = vmatmul.f32.gmra.mxu2 %v1212_v46  ;;  %v1368_v46 = vld [vmem:[%s2716_s9 + $0x30] sm:$0xff] }
 0x3ce   :  { %v1299_v39 = vpop.permute.xlu0 %1298 }
 0x427   :  { %v1250_v52 = vpop.f32.mrf.mxu2 }
 0x428   :  { %v1251_v48 = vadd.f32 %v1506_v50, %v1250_v52  ;;  %v1366_v52 = vld [vmem:[%s2716_s9 + $0x20] sm:$0xff] }
 0x42a   :  { %1604 = vtanh.f32 %v1251_v48  ;;  %v1463_v58 = vmul.f32 -1.442695, %v1251_v48  ;;  %v1365_v48 = vld [vmem:[%s2716_s9 + $0x18] sm:$0xff] }
 0x430   :  { %v1605_v35 = vpop.eup %1604 }
 0x431   :  { %1308 = vrot.lane.b32.xlu1 %v1605_v35, %s1746_s5  ;;  %v1253_v54 = vpop.f32.mrf.mxu2  ;;  %v1364_v35 = vld [vmem:[%s2716_s9 + $0x10] sm:$0xff] }
 0x432   :  { %v1254_v63 = vadd.f32 %v1506_v50, %v1253_v54  ;;  %v1367_v50 = vld [vmem:[%s2716_s9 + $0x28] sm:$0xff] }
 0x433   :  { %v1363_v54 = vld [vmem:[%s2716_s9 + $0x8] sm:$0xff] }
 0x434   :  { %1606 = vtanh.f32 %v1254_v63  ;;  %v1464_v19 = vmul.f32 -1.442695, %v1254_v63  ;;  %v1362_v63 = vld [vmem:[%s2716_s9] sm:$0xff] }
 0x436   :  { %1608 = vpow2.f32 %v1464_v19 }
 0x43a   :  { %v1607_v41 = vpop.eup %1606 }
 0x43b   :  { %1310 = vrot.lane.b32.xlu2 %v1607_v41, %s1746_s5 }
 0x43c   :  { %v1609_v59 = vpop.eup %1608 }
 0x43d   :  { %v1263_v29 = vadd.f32 1.0, %v1609_v59 }
 0x43f   :  { %1610 = vrcp.f32 %v1263_v29  ;;  %v1290_v7 = vand.u32 2147483648, %v1263_v29  ;;  %vm1284_vm15 = vweird.f32 %v1263_v29  ;;  %v1288_v2 = vand.u32 2147483647, %v1263_v29 }
 0x440   :  { %1612 = vpow2.f32 %v1463_v58 }
 0x441   :  { %v1291_v47 = vor.u32 1.1754944e-38, %v1290_v7  ;;  %vm1289_vm12 = vcmp.eq.f32.partialorder %v1288_v2, 8.507059e+37 }
 0x443   :  { %1300 = vrot.lane.b32.xlu2 %v107_v55, %s1748_s29 }
 0x445   :  { %v1611_v43 = vpop.eup %1610 }
 0x446   :  { %v1613_v24 = vpop.eup %1612  ;;  %v1280_v60 = vmul.f32 %v1611_v43, %v1263_v29  ;;  %vm1285_vm4 = vweird.f32 %v1611_v43 }
 0x447   :  { %v1262_v40 = vadd.f32 1.0, %v1613_v24  ;;  %vm1286_vm10 = vmor %vm1284_vm15, %vm1285_vm4 }
 0x448   :  { %v1281_v1 = vsub.f32 1.0, %v1280_v60 }
 0x449   :  { %1614 = vrcp.f32 %v1262_v40  ;;  %v1275_v28 = vand.u32 2147483648, %v1262_v40  ;;  %vm1269_vm9 = vweird.f32 %v1262_v40  ;;  %v1273_v20 = vand.u32 2147483647, %v1262_v40 }
 0x44a   :  { %v1282_v61 = vmul.f32 %v1611_v43, %v1281_v1 }
 0x44b   :  { %v1276_v27 = vor.u32 1.1754944e-38, %v1275_v28  ;;  %vm1274_vm8 = vcmp.eq.f32.partialorder %v1273_v20, 8.507059e+37 }
 0x44c   :  { %v1283_v8 = vadd.f32 %v1611_v43, %v1282_v61 }
 0x44e   :  { %v1287_v0 = vsel %vm1286_vm10, %v1611_v43, %v1283_v8 }
 0x44f   :  { %v1615_v56 = vpop.eup %1614  ;;  %v1292_v9 = vsel %vm1289_vm12, %v1291_v47, %v1287_v0 }
 0x450   :  { %v1265_v3 = vmul.f32 %v1615_v56, %v1262_v40  ;;  %vm1270_vm11 = vweird.f32 %v1615_v56 }
 0x451   :  { %vm1271_vm0 = vmor %vm1269_vm9, %vm1270_vm11 }
 0x452   :  { %v1266_v5 = vsub.f32 1.0, %v1265_v3 }
 0x454   :  { %v1267_v57 = vmul.f32 %v1615_v56, %v1266_v5 }
 0x456   :  { %v1268_v12 = vadd.f32 %v1615_v56, %v1267_v57 }
 0x458   :  { %v1272_v14 = vsel %vm1271_vm0, %v1615_v56, %v1268_v12  ;;  %v1507_v56 = vld [vmem:[%s2717_s10] ss:$0 sm:$0xff] }
 0x459   :  { %v1277_v17 = vsel %vm1274_vm8, %v1276_v27, %v1272_v14 }
 0x45a   :  { %v1304_v38 = vmul.f32 %v1299_v39, %v1277_v17 }
 0x495   :  { %v1311_v37 = vpop.permute.xlu2 %1310 }
 0x496   :  { %v1315_v10 = vmul.f32 %v1311_v37, %v1292_v9 }
 0x498   :  { %1320 = vrot.lane.b32.xlu0 %v1315_v10, %s1748_s29 }
 0x49d   :  { %v1301_v36 = vpop.permute.xlu2 %1300 }
 0x49e   :  { %v1305_v6 = vmul.f32 %v1301_v36, %v1292_v9 }
 0x4a3   :  { %v1309_v18 = vpop.permute.xlu1 %1308 }
 0x4a4   :  { %v1314_v33 = vmul.f32 %v1309_v18, %v1277_v17 }
 0x4a6   :  { %1318 = vrot.lane.b32.xlu1 %v1314_v33, %s1748_s29 }
 0x50a   :  { %v1321_v21 = vpop.permute.xlu0 %1320 }
 0x50b   :  { %v1325_v15 = vadd.f32 %v1321_v21, %v1305_v6 }
 0x50d   :  { %1616 = vtanh.f32 %v1325_v15 }
 0x513   :  { %v1617_v11 = vpop.eup %1616 }
 0x514   :  { %1332 = vrot.lane.b32.xlu2 %v1617_v11, %s1746_s5 }
 0x518   :  { %v1319_v22 = vpop.permute.xlu1 %1318 }
 0x519   :  { %v1324_v13 = vadd.f32 %v1319_v22, %v1304_v38 }
 0x51b   :  { %1618 = vtanh.f32 %v1324_v13 }
 0x521   :  { %v1619_v25 = vpop.eup %1618 }
 0x522   :  { %1330 = vrot.lane.b32.xlu1 %v1619_v25, %s1746_s5 }
 0x52a   :  { %1352 = vrot.lane.b32.xlu1 %v2453_v34, %s1747_s6  ;;  %v1377_v34 = vld [vmem:[%s2716_s9 + $0x78] sm:$0xff] }
 0x52b   :  { %1382 = vmatpush.msra.mxu3 %v1377_v34 }
 0x52d   :  { %1383 = vmatpush.msra.mxu3 %v1376_v31 }
 0x56e   :  { %v1333_v23 = vpop.permute.xlu2 %1332 }
 0x56f   :  { %v1337_v16 = vmul.f32 %v1333_v23, %v1292_v9 }
 0x571   :  { %v1499_v26 = vpack.i.bf16 %v2615_v45, %v1337_v16  ;;  %v1370_v45 = vld [vmem:[%s2716_s9 + $0x40] sm:$0xff] }
 0x573   :  { %1500 = vrot.lane.b32.xlu2 %v1499_v26, %s1748_s29 }
 0x57b   :  { %1407 = vrot.lane.b32.xlu2 %v1337_v16, %s1747_s6 }
 0x594   :  { %v1331_v30 = vpop.permute.xlu1 %1330 }
 0x595   :  { %v1336_v53 = vmul.f32 %v1331_v30, %v1277_v17 }
 0x597   :  { %v1494_v32 = vpack.i.bf16 %v2604_v44, %v1336_v53  ;;  %1405 = vrot.lane.b32.xlu1 %v1336_v53, %s1747_s6  ;;  %v1375_v44 = vld [vmem:[%s2716_s9 + $0x68] sm:$0xff] }
 0x598   :  { %1384 = vmatpush.msra.mxu3 %v1375_v44 }
 0x599   :  { %1495 = vrot.lane.b32.xlu0 %v1494_v32, %s1748_s29 }
 0x59c   :  { %v1353_v59 = vpop.permute.xlu1 %1352 }
 0x59f   :  { %1415 = vrot.lane.b32.xlu1 %v1325_v15, %s1746_s5 }
 0x5a1   :  { %1354 = vrot.lane.b32.xlu0 %v2479_v62, %s1747_s6  ;;  %v1374_v62 = vld [vmem:[%s2716_s9 + $0x60] sm:$0xff] }
 0x5a2   :  { %1385 = vmatpush.msra.mxu3 %v1374_v62 }
 0x5a4   :  { %1386 = vmatpush.msra.mxu3 %v1373_v51 }
 0x5a6   :  { %1387 = vmatpush.msra.mxu3 %v1372_v42 }
 0x5a8   :  { %1388 = vmatpush.msra.mxu3 %v1371_v4 }
 0x5a9   :  { %1413 = vrot.lane.b32.xlu0 %v1324_v13, %s1746_s5  ;;  %s1429_s5 = sshll.u32 %s1749_s18, 4  ;;  %s1430_s5 = int_to_ptr.vmem [resolvable:$true] %s1429_s5 }
 0x5aa   :  { %1389 = vmatpush.msra.mxu3 %v1370_v45 }
 0x5ac   :  { %1390 = vmatpush.msra.mxu3 %v1369_v49 }
 0x5ae   :  { %1391 = vmatpush.msra.mxu3 %v1368_v46 }
 0x5b0   :  { %1392 = vmatpush.msra.mxu3 %v1367_v50 }
 0x5b2   :  { %1393 = vmatpush.msra.mxu3 %v1366_v52 }
 0x5b4   :  { %1394 = vmatpush.msra.mxu3 %v1365_v48 }
 0x5b6   :  { %1395 = vmatpush.msra.mxu3 %v1364_v35 }
 0x5b8   :  { %1396 = vmatpush.msra.mxu3 %v1363_v54 }
 0x5ba   :  { %1397 = vmatpush.msra.mxu3 %v1362_v63 }
 0x5cd   :  { %v1501_v58 = vpop.permute.xlu2 %1500 }
 0x5ce   :  { %v1503_v24 = vunpack.i.h.bf16 %v1501_v58  ;;  %v1502_v60 = vunpack.i.l.bf16 %v1501_v58 }
 0x5d0   :  { %v1359_v1 = vsel %vm2755_vm6, %v1502_v60, %v1503_v24 }
 0x5d5   :  { %v1408_v9 = vpop.permute.xlu2 %1407 }
 0x609   :  { %v1406_v7 = vpop.permute.xlu1 %1405 }
 0x60b   :  { %v1496_v41 = vpop.permute.xlu0 %1495 }
 0x60c   :  { %v1498_v55 = vunpack.i.h.bf16 %v1496_v41  ;;  %v1497_v19 = vunpack.i.l.bf16 %v1496_v41 }
 0x60e   :  { %v1358_v29 = vsel %vm2754_vm7, %v1497_v19, %v1498_v55 }
 0x60f   :  { %v1360_v43 = vsel %vm1210_vm5, %v1358_v29, %v1353_v59 }
 0x610   :  { %1398 = vmatmul.f32.vlgmr.msra.gmra.mxu3 %v1360_v43 }
 0x611   :  { %v1416_v10 = vpop.permute.xlu1 %1415 }
 0x613   :  { %v1355_v40 = vpop.permute.xlu0 %1354 }
 0x614   :  { %v1361_v61 = vsel %vm1210_vm5, %v1359_v1, %v1355_v40 }
 0x618   :  { %1401 = vmatmul.f32.gmra.mxu3 %v1361_v61 }
 0x61b   :  { %v1414_v2 = vpop.permute.xlu0 %1413 }
 0x693   :  { %v1399_v8 = vpop.f32.mrf.mxu3 }
 0x694   :  { %v1400_v3 = vadd.f32 %v1507_v56, %v1399_v8 }
 0x696   :  { %v1419_v0 = vsel %vm150_vm1, %v1400_v3, %v1406_v7 }
 0x697   :  { %v1421_v47 = vsel %vm1210_vm5, %v1419_v0, %v1414_v2 }
 0x698   :  { %1423 = vst [vmem:[#allocation8] sm:$0xff] %v1421_v47 }
 0x69b   :  { %v1402_v5 = vpop.f32.mrf.mxu3 }
 0x69c   :  { %v1403_v37 = vadd.f32 %v1507_v56, %v1402_v5 }
 0x69e   :  { %v1420_v57 = vsel %vm150_vm1, %v1403_v37, %v1408_v9 }
 0x69f   :  { %v1422_v12 = vsel %vm1210_vm5, %v1420_v57, %v1416_v10 }
 0x6a0   :  { %1424 = vst [vmem:[#allocation8 + $0x8] sm:$0xff] %v1422_v12 }
 0x6a1   :  { %1437 = dma.vmem_to_hbm [thread:$0]  %s1430_s5, 256, %s1432_s4, [#allocation4], %s1741_s25, %s1741_s25, %s1742_s26  }
 0x6a2   :  { %1738 = dma.done.wait [#allocation4], 256  }
 0x6a3   :  { %1739 = vsyncadd [#allocation4], 4294967040 }
 0x6a4   :  { %1442 = vsyncpa [#allocation3], 1 }
 0x6a5   :  { %1443 = vsyncpa [#allocation6], 1 }
 0x6a6   :  { %1444 = vsyncpa [#allocation4], 1 }

</bundles_post_ra>
